<compile_context>
chip_gen: v7x
topology: tpu7x:2x2x1
jax: 0.10.0
libtpu: 0.0.40
codegen_flags: <defaults>
</compile_context>

<pallas_src>
import numpy as np
import jax
import jax.numpy as jnp
from jax.experimental import pallas as pl
from jax.experimental.pallas import tpu as pltpu

IN_DIM, H1, H2 = 120, 128, 512   # network: 120 -> 128 -> 512 -> 128 -> 120
D_PAD = 128                      # feature dim padded to a full lane width
OUT_LANES = 128                  # lane-dense output slab width
NEG_BIG = -1.0e30                # bias value for padded layer-4 lanes


def dsebm_kernel(x_ref, noise_ref, bp_ref,
                 w1t_ref, w1_ref, b1_ref,
                 w2t_ref, w2_ref, b2_ref,
                 w3t_ref, w3_ref, b3_ref,
                 w4t_ref, w4_ref, b4_ref,
                 out_ref):
    x = x_ref[...]                               # (tb, 128) f32, lanes>=120 are 0
    bprime = bp_ref[...]                         # (tb, 128)
    tb = x.shape[0]

    # Stack clean and noisy rows -> ONE pass through forward + backward chain.
    inp = jnp.concatenate([x, x + noise_ref[...]], axis=0)   # (2*tb, 128)

    def fdot(h, wt_ref):
        # y = h @ W^T ; wt is the (in, out) layout -> plain dot, no transpose.
        wt = wt_ref[...]
        return jnp.dot(h.astype(wt.dtype), wt, preferred_element_type=jnp.float32)

    def bdot(g, w_ref):
        # g_prev = g @ W ; w is the (out, in) layout -> plain dot, no transpose.
        w = w_ref[...]
        return jnp.dot(g.astype(w.dtype), w, preferred_element_type=jnp.float32)

    def act(z):
        # One exp shared between softplus (forward) and sigmoid (backward).
        #   softplus(z) = max(z,0) + log1p(exp(-|z|))   (torch threshold=20)
        #   sigmoid(z)  = 1/(1+e)  if z>=0 else e/(1+e),  e = exp(-|z|)
        e = jnp.exp(-jnp.abs(z))
        inv = pl.reciprocal(1.0 + e, approx=True)
        sp = jnp.where(z > 20.0, z, jnp.maximum(z, 0.0) + jnp.log1p(e))
        sig = jnp.where(z >= 0.0, inv, e * inv)
        return sp, sig

    # ---- fused forward + analytic backward (softplus' = sigmoid) ----
    z1 = fdot(inp, w1t_ref) + b1_ref[...]
    h1, s1 = act(z1)
    z2 = fdot(h1, w2t_ref) + b2_ref[...]
    h2, s2 = act(z2)
    z3 = fdot(h2, w3t_ref) + b3_ref[...]
    h3, s3 = act(z3)
    z4 = fdot(h3, w4t_ref) + b4_ref[...]
    # Layer 4: sigmoid needed for ALL rows (it seeds the backward); softplus
    # only needed on the clean half (net(x_noise) is never consumed).
    e4 = jnp.exp(-jnp.abs(z4))
    inv4 = pl.reciprocal(1.0 + e4, approx=True)
    s4 = jnp.where(z4 >= 0.0, inv4, e4 * inv4)
    z4c = z4[:tb]
    e4c = e4[:tb]
    h4c = jnp.where(z4c > 20.0, z4c, jnp.maximum(z4c, 0.0) + jnp.log1p(e4c))
    # Padded lanes (bias = -1e30): softplus == 0 and sigmoid == 0 exactly, so
    # they vanish from the net-output sum and the backward chain.

    g3 = bdot(s4, w4_ref) * s3
    g2 = bdot(g3, w3_ref) * s2
    g1 = bdot(g2, w2_ref) * s1
    gx = bdot(g1, w1_ref)                        # d(sum net)/d(input); padded lanes 0

    grad_x = gx[:tb]
    grad_xn = gx[tb:]

    # energy       = 0.5*sum((x - b')^2) - sum(net(x))
    # d(energy)/dx = (x - b') - d(sum net(x))/dx
    # fx           = x - d(energy)/dx = b' + d(sum net(x))/dx
    fx_noise = bprime + grad_xn
    d_loss = x - fx_noise
    loss_rows = jnp.sum(d_loss * d_loss, axis=1, keepdims=True)          # (tb, 1)

    flat = x - bprime
    energy_rows = (0.5 * jnp.sum(flat * flat, axis=1, keepdims=True)
                   - jnp.sum(h4c, axis=1, keepdims=True))                # (tb, 1)

    delta = x - (bprime + grad_x)                # = d(energy)/dx on clean rows
    recon_rows = jnp.sqrt(jnp.sum(delta * delta, axis=1, keepdims=True)) # (tb, 1)

    # Lane-dense output block: zero-fill once, then 3 narrow column stores
    # (cheaper than building the full slab with broadcast+select chains).
    out_ref[...] = jnp.zeros_like(out_ref)
    out_ref[:, 0:1] = energy_rows
    out_ref[:, 1:2] = recon_rows
    out_ref[:, 2:3] = loss_rows


def _pick_batch_tile(B):
    """Rows per grid step.  2*tb rows are stacked per step, so tb=128 already
    fills a 256-wide MXU (v6e/v7x) and tb=256 keeps VMEM tiny on every
    generation; B >= 256 always yields >= 2 grid steps so v7x megacore can
    split tiles across its two TensorCores."""
    if B <= 255:
        return B                      # one full-batch tile (block == array dims)
    return 128 if B < 1024 else 256


def _pad_cols(a, to):
    pad = to - a.shape[1]
    return a if pad == 0 else jnp.pad(a, ((0, 0), (0, pad)))


def dsebm_forward(x, noise, b_prime, params, *, dot_dtype=jnp.bfloat16, tb=None):
    """params: list of (W, b) in PyTorch layout (out_features, in_features).

    dot_dtype: MXU operand dtype (bf16 default; f32 accumulation is preserved
    via preferred_element_type).  Pass jnp.float32 for bit-tighter agreement.
    """
    B, D = x.shape
    assert D == IN_DIM

    if tb is None:
        tb = _pick_batch_tile(B)
    Bp = pl.cdiv(B, tb) * tb
    nb = Bp // tb

    # ---- feature padding 120 -> 128 (zero lanes; sums are unaffected) ----
    xp = _pad_cols(x.astype(jnp.float32), D_PAD)
    noisep = _pad_cols(noise.astype(jnp.float32), D_PAD)
    bpp = _pad_cols(b_prime.astype(jnp.float32), D_PAD)
    if Bp != B:                                   # zero-pad batch rows if needed
        rp = Bp - B
        xp = jnp.pad(xp, ((0, rp), (0, 0)))
        noisep = jnp.pad(noisep, ((0, rp), (0, 0)))
        bpp = jnp.pad(bpp, ((0, rp), (0, 0)))

    (w1, b1), (w2, b2), (w3, b3), (w4, b4) = params
    w1p = jnp.pad(w1, ((0, 0), (0, D_PAD - IN_DIM)))          # pad `in` axis
    w4p = jnp.pad(w4, ((0, D_PAD - IN_DIM), (0, 0)))          # pad `out` axis
    # Padded layer-4 bias lanes get -1e30: softplus and sigmoid there are 0,
    # so the padded net-output lanes drop out of every sum / gradient.
    b4p = jnp.concatenate(
        [b4.astype(jnp.float32),
         jnp.full((D_PAD - IN_DIM,), NEG_BIG, jnp.float32)])

    ws_oi = [w1p, w2, w3, w4p]                                 # (out, in) for bwd
    wts = [jnp.transpose(w).astype(dot_dtype) for w in ws_oi]  # (in, out) for fwd
    ws = [w.astype(dot_dtype) for w in ws_oi]
    bs = [b.reshape(1, -1).astype(jnp.float32) for b in (b1, b2, b3, b4p)]

    args = (xp, noisep, bpp,
            wts[0], ws[0], bs[0],
            wts[1], ws[1], bs[1],
            wts[2], ws[2], bs[2],
            wts[3], ws[3], bs[3])

    row_spec = pl.BlockSpec((tb, D_PAD), lambda i: (i, 0))

    def const_spec(a):                            # VMEM-resident across the grid
        return pl.BlockSpec(a.shape, lambda i: (0, 0))

    in_specs = [row_spec, row_spec, row_spec] + [const_spec(a) for a in args[3:]]
    out_spec = pl.BlockSpec((tb, OUT_LANES), lambda i: (i, 0))

    # Advisory cost: 8 dots over 2*Bp rows (fwd + bwd) + exp/log1p/recip.
    kn = H1 * D_PAD + H2 * H1 + H1 * H2 + D_PAD * H1
    rows = 2 * Bp
    n_act = H1 + H2 + H1 + D_PAD
    cost = pl.CostEstimate(
        flops=2 * rows * kn * 2,
        transcendentals=3 * rows * n_act,
        bytes_accessed=int(2 * kn * jnp.dtype(dot_dtype).itemsize
                           + n_act * 4
                           + 3 * Bp * D_PAD * 4
                           + Bp * OUT_LANES * 4),
    )

    slab = pl.pallas_call(
        dsebm_kernel,
        out_shape=jax.ShapeDtypeStruct((Bp, OUT_LANES), jnp.float32),
        grid_spec=pltpu.PrefetchScalarGridSpec(
            num_scalar_prefetch=0,
            grid=(nb,),
            in_specs=in_specs,
            out_specs=out_spec,
        ),
        compiler_params=pltpu.CompilerParams(
            dimension_semantics=("parallel",)),
        cost_estimate=cost,
    )(*args)

    energy = slab[:B, 0]
    recon = slab[:B, 1]
    loss = jnp.sum(slab[:B, 2]) / (B * IN_DIM)
    return loss, energy, recon


# ---------------- pure-JAX reference (for verification) ----------------
def _network_ref(x, params):
    h = x
    for (w, b) in params:
        h = jax.nn.softplus(h @ w.T + b)
    return h


def _ref_forward(x, noise, b_prime, params):
    x_noise = x + noise
    net_out = _network_ref(x, params)

    def energy_fn(xx):
        return 0.5 * jnp.sum((xx - b_prime) ** 2) - jnp.sum(_network_ref(xx, params))

    g_x = jax.grad(energy_fn)(x)
    g_xn = jax.grad(energy_fn)(x_noise)
    fx = x - g_x
    fx_noise = x_noise - g_xn
    loss = jnp.mean((x - fx_noise) ** 2)
    flat = (x - b_prime).reshape(x.shape[0], -1)
    score_e = 0.5 * jnp.sum(flat ** 2, axis=1) - jnp.sum(net_out, axis=1)
    delta = (x - fx).reshape(x.shape[0], -1)
    score_r = jnp.sqrt(jnp.sum(delta ** 2, axis=1))
    return loss, score_e, score_r


def _init_linear(key, out_f, in_f):
    # deterministic PyTorch-like init: U(-1/sqrt(in), 1/sqrt(in))
    kw, kb = jax.random.split(key)
    bound = 1.0 / np.sqrt(in_f)
    w = jax.random.uniform(kw, (out_f, in_f), jnp.float32, -bound, bound)
    b = jax.random.uniform(kb, (out_f,), jnp.float32, -bound, bound)
    return w, b


if __name__ == "__main__":
    B = 8  # opts['batch_size']
    key = jax.random.PRNGKey(0)
    k_x, k_n, k1, k2, k3, k4 = jax.random.split(key, 6)

    x = jax.random.normal(k_x, (B, IN_DIM), jnp.float32)
    noise = jax.random.normal(k_n, (B, IN_DIM), jnp.float32)      # torch.randn_like
    b_prime = jnp.zeros((B, IN_DIM), jnp.float32)                 # nn.Parameter(zeros)

    params = [
        _init_linear(k1, H1, IN_DIM),   # dense1:     120 -> 128
        _init_linear(k2, H2, H1),       # dense2:     128 -> 512
        _init_linear(k3, H1, H2),       # inv_dense2: 512 -> 128
        _init_linear(k4, IN_DIM, H1),   # inv_dense1: 128 -> 120
    ]

    loss, score_e, score_r = dsebm_forward(x, noise, b_prime, params)
    jax.block_until_ready((loss, score_e, score_r))

    # verify against a plain-JAX autodiff reference (bf16 dots -> 2e-2 tol)
    loss_r, score_e_r, score_r_r = _ref_forward(x, noise, b_prime, params)
    assert np.allclose(np.asarray(loss), np.asarray(loss_r), rtol=2e-2, atol=2e-2)
    assert np.allclose(np.asarray(score_e), np.asarray(score_e_r), rtol=2e-2, atol=2e-2)
    assert np.allclose(np.asarray(score_r), np.asarray(score_r_r), rtol=2e-2, atol=2e-2)

    print("KERNEL_OK")
</pallas_src>

<mosaic_0001>
module attributes {stable_mosaic.version = 11 : i64} {
  func.func @dsebm_kernel(%arg0: i32, %arg1: memref<8x128xf32, #tpu.memory_space<vmem>>, %arg2: memref<8x128xf32, #tpu.memory_space<vmem>>, %arg3: memref<8x128xf32, #tpu.memory_space<vmem>>, %arg4: memref<128x128xbf16, #tpu.memory_space<vmem>>, %arg5: memref<128x128xbf16, #tpu.memory_space<vmem>>, %arg6: memref<1x128xf32, #tpu.memory_space<vmem>>, %arg7: memref<128x512xbf16, #tpu.memory_space<vmem>>, %arg8: memref<512x128xbf16, #tpu.memory_space<vmem>>, %arg9: memref<1x512xf32, #tpu.memory_space<vmem>>, %arg10: memref<512x128xbf16, #tpu.memory_space<vmem>>, %arg11: memref<128x512xbf16, #tpu.memory_space<vmem>>, %arg12: memref<1x128xf32, #tpu.memory_space<vmem>>, %arg13: memref<128x128xbf16, #tpu.memory_space<vmem>>, %arg14: memref<128x128xbf16, #tpu.memory_space<vmem>>, %arg15: memref<1x128xf32, #tpu.memory_space<vmem>>, %arg16: memref<8x128xf32, #tpu.memory_space<vmem>>) attributes {dimension_semantics = [#tpu.dimension_semantics<parallel>], iteration_bounds = array<i64: 1>, scalar_prefetch = 0 : i64, scratch_operands = 0 : i64, tpu.core_type = #tpu.core_type<tc>, window_params = [{transform_indices = @transform_0, window_bounds = array<i64: 8, 128>}, {transform_indices = @transform_1, window_bounds = array<i64: 8, 128>}, {transform_indices = @transform_2, window_bounds = array<i64: 8, 128>}, {pipeline_mode = #tpu.pipeline_mode<synchronous>, transform_indices = @transform_3, window_bounds = array<i64: 128, 128>}, {pipeline_mode = #tpu.pipeline_mode<synchronous>, transform_indices = @transform_4, window_bounds = array<i64: 128, 128>}, {pipeline_mode = #tpu.pipeline_mode<synchronous>, transform_indices = @transform_5, window_bounds = array<i64: 1, 128>}, {pipeline_mode = #tpu.pipeline_mode<synchronous>, transform_indices = @transform_6, window_bounds = array<i64: 128, 512>}, {pipeline_mode = #tpu.pipeline_mode<synchronous>, transform_indices = @transform_7, window_bounds = array<i64: 512, 128>}, {pipeline_mode = #tpu.pipeline_mode<synchronous>, transform_indices = @transform_8, window_bounds = array<i64: 1, 512>}, {pipeline_mode = #tpu.pipeline_mode<synchronous>, transform_indices = @transform_9, window_bounds = array<i64: 512, 128>}, {pipeline_mode = #tpu.pipeline_mode<synchronous>, transform_indices = @transform_10, window_bounds = array<i64: 128, 512>}, {pipeline_mode = #tpu.pipeline_mode<synchronous>, transform_indices = @transform_11, window_bounds = array<i64: 1, 128>}, {pipeline_mode = #tpu.pipeline_mode<synchronous>, transform_indices = @transform_12, window_bounds = array<i64: 128, 128>}, {pipeline_mode = #tpu.pipeline_mode<synchronous>, transform_indices = @transform_13, window_bounds = array<i64: 128, 128>}, {pipeline_mode = #tpu.pipeline_mode<synchronous>, transform_indices = @transform_14, window_bounds = array<i64: 1, 128>}, {transform_indices = @transform_15, window_bounds = array<i64: 8, 128>}]} {
    %c0 = arith.constant 0 : index
    %c0_0 = arith.constant 0 : index
    %0 = vector.load %arg1[%c0, %c0_0] : memref<8x128xf32, #tpu.memory_space<vmem>>, vector<8x128xf32>
    %c0_1 = arith.constant 0 : index
    %c0_2 = arith.constant 0 : index
    %1 = vector.load %arg3[%c0_1, %c0_2] : memref<8x128xf32, #tpu.memory_space<vmem>>, vector<8x128xf32>
    %c0_3 = arith.constant 0 : index
    %c0_4 = arith.constant 0 : index
    %2 = vector.load %arg2[%c0_3, %c0_4] : memref<8x128xf32, #tpu.memory_space<vmem>>, vector<8x128xf32>
    %3 = arith.addf %0, %2 : vector<8x128xf32>
    %4 = tpu.concatenate %0, %3 in 0 : vector<8x128xf32>, vector<8x128xf32> -> vector<16x128xf32>
    %c0_5 = arith.constant 0 : index
    %c0_6 = arith.constant 0 : index
    %5 = vector.load %arg4[%c0_5, %c0_6] : memref<128x128xbf16, #tpu.memory_space<vmem>>, vector<128x128xbf16>
    %6 = arith.truncf %4 : vector<16x128xf32> to vector<16x128xbf16>
    %cst = arith.constant dense<0.000000e+00> : vector<16x128xf32>
    %7 = tpu.matmul %6, %5, %cst {dimension_numbers = #tpu.dot_dimension_numbers<[1], [0], [0], [1], [0, 0, 1, 1], [], []>} : vector<16x128xbf16>, vector<128x128xbf16>, vector<16x128xf32> -> vector<16x128xf32>
    %c0_7 = arith.constant 0 : index
    %c0_8 = arith.constant 0 : index
    %8 = vector.load %arg6[%c0_7, %c0_8] : memref<1x128xf32, #tpu.memory_space<vmem>>, vector<1x128xf32>
    %9 = vector.broadcast %8 : vector<1x128xf32> to vector<16x128xf32>
    %10 = arith.addf %7, %9 : vector<16x128xf32>
    %11 = math.absf %10 : vector<16x128xf32>
    %cst_9 = arith.constant 0.000000e+00 : f32
    %12 = vector.broadcast %cst_9 : f32 to vector<16x128xf32>
    %13 = arith.subf %12, %11 : vector<16x128xf32>
    %14 = math.exp %13 : vector<16x128xf32>
    %cst_10 = arith.constant 1.000000e+00 : f32
    %15 = vector.broadcast %cst_10 : f32 to vector<16x128xf32>
    %16 = arith.addf %15, %14 : vector<16x128xf32>
    %17 = tpu.reciprocal %16 {approx = true} : vector<16x128xf32> -> vector<16x128xf32>
    %cst_11 = arith.constant 2.000000e+01 : f32
    %18 = vector.broadcast %cst_11 : f32 to vector<16x128xf32>
    %19 = arith.cmpf ogt, %10, %18 : vector<16x128xf32>
    %cst_12 = arith.constant 0.000000e+00 : f32
    %20 = vector.broadcast %cst_12 : f32 to vector<16x128xf32>
    %21 = arith.maximumf %10, %20 : vector<16x128xf32>
    %22 = math.log1p %14 : vector<16x128xf32>
    %23 = arith.addf %21, %22 : vector<16x128xf32>
    %24 = arith.select %19, %10, %23 : vector<16x128xi1>, vector<16x128xf32>
    %cst_13 = arith.constant 0.000000e+00 : f32
    %25 = vector.broadcast %cst_13 : f32 to vector<16x128xf32>
    %26 = arith.cmpf oge, %10, %25 : vector<16x128xf32>
    %27 = arith.mulf %14, %17 : vector<16x128xf32>
    %28 = arith.select %26, %17, %27 : vector<16x128xi1>, vector<16x128xf32>
    %c0_14 = arith.constant 0 : index
    %c0_15 = arith.constant 0 : index
    %29 = vector.load %arg7[%c0_14, %c0_15] : memref<128x512xbf16, #tpu.memory_space<vmem>>, vector<128x512xbf16>
    %30 = arith.truncf %24 : vector<16x128xf32> to vector<16x128xbf16>
    %cst_16 = arith.constant dense<0.000000e+00> : vector<16x512xf32>
    %31 = tpu.matmul %30, %29, %cst_16 {dimension_numbers = #tpu.dot_dimension_numbers<[1], [0], [0], [1], [0, 0, 1, 1], [], []>} : vector<16x128xbf16>, vector<128x512xbf16>, vector<16x512xf32> -> vector<16x512xf32>
    %c0_17 = arith.constant 0 : index
    %c0_18 = arith.constant 0 : index
    %32 = vector.load %arg9[%c0_17, %c0_18] : memref<1x512xf32, #tpu.memory_space<vmem>>, vector<1x512xf32>
    %33 = vector.broadcast %32 : vector<1x512xf32> to vector<16x512xf32>
    %34 = arith.addf %31, %33 : vector<16x512xf32>
    %35 = math.absf %34 : vector<16x512xf32>
    %cst_19 = arith.constant 0.000000e+00 : f32
    %36 = vector.broadcast %cst_19 : f32 to vector<16x512xf32>
    %37 = arith.subf %36, %35 : vector<16x512xf32>
    %38 = math.exp %37 : vector<16x512xf32>
    %cst_20 = arith.constant 1.000000e+00 : f32
    %39 = vector.broadcast %cst_20 : f32 to vector<16x512xf32>
    %40 = arith.addf %39, %38 : vector<16x512xf32>
    %41 = tpu.reciprocal %40 {approx = true} : vector<16x512xf32> -> vector<16x512xf32>
    %cst_21 = arith.constant 2.000000e+01 : f32
    %42 = vector.broadcast %cst_21 : f32 to vector<16x512xf32>
    %43 = arith.cmpf ogt, %34, %42 : vector<16x512xf32>
    %cst_22 = arith.constant 0.000000e+00 : f32
    %44 = vector.broadcast %cst_22 : f32 to vector<16x512xf32>
    %45 = arith.maximumf %34, %44 : vector<16x512xf32>
    %46 = math.log1p %38 : vector<16x512xf32>
    %47 = arith.addf %45, %46 : vector<16x512xf32>
    %48 = arith.select %43, %34, %47 : vector<16x512xi1>, vector<16x512xf32>
    %cst_23 = arith.constant 0.000000e+00 : f32
    %49 = vector.broadcast %cst_23 : f32 to vector<16x512xf32>
    %50 = arith.cmpf oge, %34, %49 : vector<16x512xf32>
    %51 = arith.mulf %38, %41 : vector<16x512xf32>
    %52 = arith.select %50, %41, %51 : vector<16x512xi1>, vector<16x512xf32>
    %c0_24 = arith.constant 0 : index
    %c0_25 = arith.constant 0 : index
    %53 = vector.load %arg10[%c0_24, %c0_25] : memref<512x128xbf16, #tpu.memory_space<vmem>>, vector<512x128xbf16>
    %54 = arith.truncf %48 : vector<16x512xf32> to vector<16x512xbf16>
    %cst_26 = arith.constant dense<0.000000e+00> : vector<16x128xf32>
    %55 = tpu.matmul %54, %53, %cst_26 {dimension_numbers = #tpu.dot_dimension_numbers<[1], [0], [0], [1], [0, 0, 1, 1], [], []>} : vector<16x512xbf16>, vector<512x128xbf16>, vector<16x128xf32> -> vector<16x128xf32>
    %c0_27 = arith.constant 0 : index
    %c0_28 = arith.constant 0 : index
    %56 = vector.load %arg12[%c0_27, %c0_28] : memref<1x128xf32, #tpu.memory_space<vmem>>, vector<1x128xf32>
    %57 = vector.broadcast %56 : vector<1x128xf32> to vector<16x128xf32>
    %58 = arith.addf %55, %57 : vector<16x128xf32>
    %59 = math.absf %58 : vector<16x128xf32>
    %cst_29 = arith.constant 0.000000e+00 : f32
    %60 = vector.broadcast %cst_29 : f32 to vector<16x128xf32>
    %61 = arith.subf %60, %59 : vector<16x128xf32>
    %62 = math.exp %61 : vector<16x128xf32>
    %cst_30 = arith.constant 1.000000e+00 : f32
    %63 = vector.broadcast %cst_30 : f32 to vector<16x128xf32>
    %64 = arith.addf %63, %62 : vector<16x128xf32>
    %65 = tpu.reciprocal %64 {approx = true} : vector<16x128xf32> -> vector<16x128xf32>
    %cst_31 = arith.constant 2.000000e+01 : f32
    %66 = vector.broadcast %cst_31 : f32 to vector<16x128xf32>
    %67 = arith.cmpf ogt, %58, %66 : vector<16x128xf32>
    %cst_32 = arith.constant 0.000000e+00 : f32
    %68 = vector.broadcast %cst_32 : f32 to vector<16x128xf32>
    %69 = arith.maximumf %58, %68 : vector<16x128xf32>
    %70 = math.log1p %62 : vector<16x128xf32>
    %71 = arith.addf %69, %70 : vector<16x128xf32>
    %72 = arith.select %67, %58, %71 : vector<16x128xi1>, vector<16x128xf32>
    %cst_33 = arith.constant 0.000000e+00 : f32
    %73 = vector.broadcast %cst_33 : f32 to vector<16x128xf32>
    %74 = arith.cmpf oge, %58, %73 : vector<16x128xf32>
    %75 = arith.mulf %62, %65 : vector<16x128xf32>
    %76 = arith.select %74, %65, %75 : vector<16x128xi1>, vector<16x128xf32>
    %c0_34 = arith.constant 0 : index
    %c0_35 = arith.constant 0 : index
    %77 = vector.load %arg13[%c0_34, %c0_35] : memref<128x128xbf16, #tpu.memory_space<vmem>>, vector<128x128xbf16>
    %78 = arith.truncf %72 : vector<16x128xf32> to vector<16x128xbf16>
    %cst_36 = arith.constant dense<0.000000e+00> : vector<16x128xf32>
    %79 = tpu.matmul %78, %77, %cst_36 {dimension_numbers = #tpu.dot_dimension_numbers<[1], [0], [0], [1], [0, 0, 1, 1], [], []>} : vector<16x128xbf16>, vector<128x128xbf16>, vector<16x128xf32> -> vector<16x128xf32>
    %c0_37 = arith.constant 0 : index
    %c0_38 = arith.constant 0 : index
    %80 = vector.load %arg15[%c0_37, %c0_38] : memref<1x128xf32, #tpu.memory_space<vmem>>, vector<1x128xf32>
    %81 = vector.broadcast %80 : vector<1x128xf32> to vector<16x128xf32>
    %82 = arith.addf %79, %81 : vector<16x128xf32>
    %83 = math.absf %82 : vector<16x128xf32>
    %cst_39 = arith.constant 0.000000e+00 : f32
    %84 = vector.broadcast %cst_39 : f32 to vector<16x128xf32>
    %85 = arith.subf %84, %83 : vector<16x128xf32>
    %86 = math.exp %85 : vector<16x128xf32>
    %cst_40 = arith.constant 1.000000e+00 : f32
    %87 = vector.broadcast %cst_40 : f32 to vector<16x128xf32>
    %88 = arith.addf %87, %86 : vector<16x128xf32>
    %89 = tpu.reciprocal %88 {approx = true} : vector<16x128xf32> -> vector<16x128xf32>
    %cst_41 = arith.constant 0.000000e+00 : f32
    %90 = vector.broadcast %cst_41 : f32 to vector<16x128xf32>
    %91 = arith.cmpf oge, %82, %90 : vector<16x128xf32>
    %92 = arith.mulf %86, %89 : vector<16x128xf32>
    %93 = arith.select %91, %89, %92 : vector<16x128xi1>, vector<16x128xf32>
    %94 = vector.extract_strided_slice %82 {offsets = [0, 0], sizes = [8, 128], strides = [1, 1]} : vector<16x128xf32> to vector<8x128xf32>
    %95 = vector.extract_strided_slice %86 {offsets = [0, 0], sizes = [8, 128], strides = [1, 1]} : vector<16x128xf32> to vector<8x128xf32>
    %cst_42 = arith.constant 2.000000e+01 : f32
    %96 = vector.broadcast %cst_42 : f32 to vector<8x128xf32>
    %97 = arith.cmpf ogt, %94, %96 : vector<8x128xf32>
    %cst_43 = arith.constant 0.000000e+00 : f32
    %98 = vector.broadcast %cst_43 : f32 to vector<8x128xf32>
    %99 = arith.maximumf %94, %98 : vector<8x128xf32>
    %100 = math.log1p %95 : vector<8x128xf32>
    %101 = arith.addf %99, %100 : vector<8x128xf32>
    %102 = arith.select %97, %94, %101 : vector<8x128xi1>, vector<8x128xf32>
    %c0_44 = arith.constant 0 : index
    %c0_45 = arith.constant 0 : index
    %103 = vector.load %arg14[%c0_44, %c0_45] : memref<128x128xbf16, #tpu.memory_space<vmem>>, vector<128x128xbf16>
    %104 = arith.truncf %93 : vector<16x128xf32> to vector<16x128xbf16>
    %cst_46 = arith.constant dense<0.000000e+00> : vector<16x128xf32>
    %105 = tpu.matmul %104, %103, %cst_46 {dimension_numbers = #tpu.dot_dimension_numbers<[1], [0], [0], [1], [0, 0, 1, 1], [], []>} : vector<16x128xbf16>, vector<128x128xbf16>, vector<16x128xf32> -> vector<16x128xf32>
    %106 = arith.mulf %105, %76 : vector<16x128xf32>
    %c0_47 = arith.constant 0 : index
    %c0_48 = arith.constant 0 : index
    %107 = vector.load %arg11[%c0_47, %c0_48] : memref<128x512xbf16, #tpu.memory_space<vmem>>, vector<128x512xbf16>
    %108 = arith.truncf %106 : vector<16x128xf32> to vector<16x128xbf16>
    %cst_49 = arith.constant dense<0.000000e+00> : vector<16x512xf32>
    %109 = tpu.matmul %108, %107, %cst_49 {dimension_numbers = #tpu.dot_dimension_numbers<[1], [0], [0], [1], [0, 0, 1, 1], [], []>} : vector<16x128xbf16>, vector<128x512xbf16>, vector<16x512xf32> -> vector<16x512xf32>
    %110 = arith.mulf %109, %52 : vector<16x512xf32>
    %c0_50 = arith.constant 0 : index
    %c0_51 = arith.constant 0 : index
    %111 = vector.load %arg8[%c0_50, %c0_51] : memref<512x128xbf16, #tpu.memory_space<vmem>>, vector<512x128xbf16>
    %112 = arith.truncf %110 : vector<16x512xf32> to vector<16x512xbf16>
    %cst_52 = arith.constant dense<0.000000e+00> : vector<16x128xf32>
    %113 = tpu.matmul %112, %111, %cst_52 {dimension_numbers = #tpu.dot_dimension_numbers<[1], [0], [0], [1], [0, 0, 1, 1], [], []>} : vector<16x512xbf16>, vector<512x128xbf16>, vector<16x128xf32> -> vector<16x128xf32>
    %114 = arith.mulf %113, %28 : vector<16x128xf32>
    %c0_53 = arith.constant 0 : index
    %c0_54 = arith.constant 0 : index
    %115 = vector.load %arg5[%c0_53, %c0_54] : memref<128x128xbf16, #tpu.memory_space<vmem>>, vector<128x128xbf16>
    %116 = arith.truncf %114 : vector<16x128xf32> to vector<16x128xbf16>
    %cst_55 = arith.constant dense<0.000000e+00> : vector<16x128xf32>
    %117 = tpu.matmul %116, %115, %cst_55 {dimension_numbers = #tpu.dot_dimension_numbers<[1], [0], [0], [1], [0, 0, 1, 1], [], []>} : vector<16x128xbf16>, vector<128x128xbf16>, vector<16x128xf32> -> vector<16x128xf32>
    %118 = vector.extract_strided_slice %117 {offsets = [0, 0], sizes = [8, 128], strides = [1, 1]} : vector<16x128xf32> to vector<8x128xf32>
    %119 = vector.extract_strided_slice %117 {offsets = [8, 0], sizes = [8, 128], strides = [1, 1]} : vector<16x128xf32> to vector<8x128xf32>
    %120 = arith.addf %1, %119 : vector<8x128xf32>
    %121 = arith.subf %0, %120 : vector<8x128xf32>
    %122 = arith.mulf %121, %121 : vector<8x128xf32>
    %cst_56 = arith.constant dense<0.000000e+00> : vector<8xf32>
    %123 = vector.multi_reduction <add>, %122, %cst_56 [1] : vector<8x128xf32> to vector<8xf32>
    %124 = vector.shape_cast %123 : vector<8xf32> to vector<8x1xf32>
    %125 = arith.subf %0, %1 : vector<8x128xf32>
    %126 = arith.mulf %125, %125 : vector<8x128xf32>
    %cst_57 = arith.constant dense<0.000000e+00> : vector<8xf32>
    %127 = vector.multi_reduction <add>, %126, %cst_57 [1] : vector<8x128xf32> to vector<8xf32>
    %128 = vector.shape_cast %127 : vector<8xf32> to vector<8x1xf32>
    %cst_58 = arith.constant 5.000000e-01 : f32
    %129 = vector.broadcast %cst_58 : f32 to vector<8x1xf32>
    %130 = arith.mulf %129, %128 : vector<8x1xf32>
    %cst_59 = arith.constant dense<0.000000e+00> : vector<8xf32>
    %131 = vector.multi_reduction <add>, %102, %cst_59 [1] : vector<8x128xf32> to vector<8xf32>
    %132 = vector.shape_cast %131 : vector<8xf32> to vector<8x1xf32>
    %133 = arith.subf %130, %132 : vector<8x1xf32>
    %134 = arith.addf %1, %118 : vector<8x128xf32>
    %135 = arith.subf %0, %134 : vector<8x128xf32>
    %136 = arith.mulf %135, %135 : vector<8x128xf32>
    %cst_60 = arith.constant dense<0.000000e+00> : vector<8xf32>
    %137 = vector.multi_reduction <add>, %136, %cst_60 [1] : vector<8x128xf32> to vector<8xf32>
    %138 = vector.shape_cast %137 : vector<8xf32> to vector<8x1xf32>
    %139 = math.sqrt %138 : vector<8x1xf32>
    %cst_61 = arith.constant 0.000000e+00 : f32
    %140 = vector.broadcast %cst_61 : f32 to vector<8x128xf32>
    %c0_62 = arith.constant 0 : index
    %c0_63 = arith.constant 0 : index
    %141 = vector.load %arg16[%c0_62, %c0_63] : memref<8x128xf32, #tpu.memory_space<vmem>>, vector<8x128xf32>
    tpu.vector_store %arg16[%c0_62, %c0_63], %140 {strides = array<i32>} : memref<8x128xf32, #tpu.memory_space<vmem>>, vector<8x128xf32>,
    %c0_64 = arith.constant 0 : index
    %c0_65 = arith.constant 0 : index
    %142 = vector.load %arg16[%c0_64, %c0_65] : memref<8x128xf32, #tpu.memory_space<vmem>>, vector<8x1xf32>
    tpu.vector_store %arg16[%c0_64, %c0_65], %133 {strides = array<i32>} : memref<8x128xf32, #tpu.memory_space<vmem>>, vector<8x1xf32>,
    %c0_66 = arith.constant 0 : index
    %c1 = arith.constant 1 : index
    %143 = vector.load %arg16[%c0_66, %c1] : memref<8x128xf32, #tpu.memory_space<vmem>>, vector<8x1xf32>
    tpu.vector_store %arg16[%c0_66, %c1], %139 {strides = array<i32>} : memref<8x128xf32, #tpu.memory_space<vmem>>, vector<8x1xf32>,
    %c0_67 = arith.constant 0 : index
    %c2 = arith.constant 2 : index
    %144 = vector.load %arg16[%c0_67, %c2] : memref<8x128xf32, #tpu.memory_space<vmem>>, vector<8x1xf32>
    tpu.vector_store %arg16[%c0_67, %c2], %124 {strides = array<i32>} : memref<8x128xf32, #tpu.memory_space<vmem>>, vector<8x1xf32>,
    return
  }
  func.func @transform_0(%arg0: i32) -> (i32, i32) {
    %c0_i32 = arith.constant 0 : i32
    %c0_i32_0 = arith.constant 0 : i32
    return %arg0, %c0_i32 : i32, i32
  }
  func.func @transform_1(%arg0: i32) -> (i32, i32) {
    %c0_i32 = arith.constant 0 : i32
    %c0_i32_0 = arith.constant 0 : i32
    return %arg0, %c0_i32 : i32, i32
  }
  func.func @transform_2(%arg0: i32) -> (i32, i32) {
    %c0_i32 = arith.constant 0 : i32
    %c0_i32_0 = arith.constant 0 : i32
    return %arg0, %c0_i32 : i32, i32
  }
  func.func @transform_3(%arg0: i32) -> (i32, i32) {
    %c0_i32 = arith.constant 0 : i32
    %c0_i32_0 = arith.constant 0 : i32
    %c0_i32_1 = arith.constant 0 : i32
    return %c0_i32, %c0_i32_0 : i32, i32
  }
  func.func @transform_4(%arg0: i32) -> (i32, i32) {
    %c0_i32 = arith.constant 0 : i32
    %c0_i32_0 = arith.constant 0 : i32
    %c0_i32_1 = arith.constant 0 : i32
    return %c0_i32, %c0_i32_0 : i32, i32
  }
  func.func @transform_5(%arg0: i32) -> (i32, i32) {
    %c0_i32 = arith.constant 0 : i32
    %c0_i32_0 = arith.constant 0 : i32
    %c0_i32_1 = arith.constant 0 : i32
    return %c0_i32, %c0_i32_0 : i32, i32
  }
  func.func @transform_6(%arg0: i32) -> (i32, i32) {
    %c0_i32 = arith.constant 0 : i32
    %c0_i32_0 = arith.constant 0 : i32
    %c0_i32_1 = arith.constant 0 : i32
    return %c0_i32, %c0_i32_0 : i32, i32
  }
  func.func @transform_7(%arg0: i32) -> (i32, i32) {
    %c0_i32 = arith.constant 0 : i32
    %c0_i32_0 = arith.constant 0 : i32
    %c0_i32_1 = arith.constant 0 : i32
    return %c0_i32, %c0_i32_0 : i32, i32
  }
  func.func @transform_8(%arg0: i32) -> (i32, i32) {
    %c0_i32 = arith.constant 0 : i32
    %c0_i32_0 = arith.constant 0 : i32
    %c0_i32_1 = arith.constant 0 : i32
    return %c0_i32, %c0_i32_0 : i32, i32
  }
  func.func @transform_9(%arg0: i32) -> (i32, i32) {
    %c0_i32 = arith.constant 0 : i32
    %c0_i32_0 = arith.constant 0 : i32
    %c0_i32_1 = arith.constant 0 : i32
    return %c0_i32, %c0_i32_0 : i32, i32
  }
  func.func @transform_10(%arg0: i32) -> (i32, i32) {
    %c0_i32 = arith.constant 0 : i32
    %c0_i32_0 = arith.constant 0 : i32
    %c0_i32_1 = arith.constant 0 : i32
    return %c0_i32, %c0_i32_0 : i32, i32
  }
  func.func @transform_11(%arg0: i32) -> (i32, i32) {
    %c0_i32 = arith.constant 0 : i32
    %c0_i32_0 = arith.constant 0 : i32
    %c0_i32_1 = arith.constant 0 : i32
    return %c0_i32, %c0_i32_0 : i32, i32
  }
  func.func @transform_12(%arg0: i32) -> (i32, i32) {
    %c0_i32 = arith.constant 0 : i32
    %c0_i32_0 = arith.constant 0 : i32
    %c0_i32_1 = arith.constant 0 : i32
    return %c0_i32, %c0_i32_0 : i32, i32
  }
  func.func @transform_13(%arg0: i32) -> (i32, i32) {
    %c0_i32 = arith.constant 0 : i32
    %c0_i32_0 = arith.constant 0 : i32
    %c0_i32_1 = arith.constant 0 : i32
    return %c0_i32, %c0_i32_0 : i32, i32
  }
  func.func @transform_14(%arg0: i32) -> (i32, i32) {
    %c0_i32 = arith.constant 0 : i32
    %c0_i32_0 = arith.constant 0 : i32
    %c0_i32_1 = arith.constant 0 : i32
    return %c0_i32, %c0_i32_0 : i32, i32
  }
  func.func @transform_15(%arg0: i32) -> (i32, i32) {
    %c0_i32 = arith.constant 0 : i32
    %c0_i32_0 = arith.constant 0 : i32
    return %arg0, %c0_i32 : i32, i32
  }
}

</mosaic_0001>

<bundles_post_ra>
// kernel: tpu_custom_call.1
= control target key start
LH: loop header
LB: loop body
LE: loop exit
PB: predicated region body
PF: predicated region fallthrough
CT: control target
= control target key end

     0   :  { %20 = vsyncpa [#allocation3], 0  ;;  %s3798_s0 = inlined_call_operand.hbm [shape: f32[8,128], index: 0, kind: input, shape index: {}]   ;;  %s3799_s1 = inlined_call_operand.hbm [shape: f32[8,128], index: 1, kind: input, shape index: {}]   ;;  %s3800_s2 = inlined_call_operand.hbm [shape: f32[8,128], index: 2, kind: input, shape index: {}]   ;;  %s3801_s3 = inlined_call_operand.hbm [shape: bf16[128,128], index: 3, kind: input, shape index: {}]   ;;  %s3802_s4 = inlined_call_operand.hbm [shape: bf16[128,128], index: 4, kind: input, shape index: {}]   ;;  %s3803_s5 = inlined_call_operand.vmem [shape: f32[1,128], index: 5, kind: input, shape index: {}]   ;;  %s3804_s6 = inlined_call_operand.hbm [shape: bf16[128,512], index: 6, kind: input, shape index: {}]   ;;  %s3805_s7 = inlined_call_operand.hbm [shape: bf16[512,128], index: 7, kind: input, shape index: {}]   ;;  %s3806_s8 = inlined_call_operand.vmem [shape: f32[1,512], index: 8, kind: input, shape index: {}]   ;;  %s3807_s9 = inlined_call_operand.hbm [shape: bf16[512,128], index: 9, kind: input, shape index: {}]   ;;  %s3808_s10 = inlined_call_operand.hbm [shape: bf16[128,512], index: 10, kind: input, shape index: {}]   ;;  %s3809_s11 = inlined_call_operand.vmem [shape: f32[1,128], index: 11, kind: input, shape index: {}]   ;;  %s3810_s12 = inlined_call_operand.hbm [shape: bf16[128,128], index: 12, kind: input, shape index: {}]   ;;  %s3811_s13 = inlined_call_operand.hbm [shape: bf16[128,128], index: 13, kind: input, shape index: {}]   ;;  %s3812_s14 = inlined_call_operand.vmem [shape: f32[1,128], index: 14, kind: input, shape index: {}]   ;;  %s3813_s15 = inlined_call_operand.hbm [shape: f32[8,128], index: 15, kind: output, shape index: {}]  }
   0x1   :  { %21 = vsyncpa [#allocation6], 0 }
   0x2   :  { %22 = vsyncpa [#allocation9], 0 }
   0x3   :  { %23 = vsyncpa [#allocation12], 0 }
   0x4   :  { %24 = vsyncpa [#allocation15], 0 }
   0x5   :  { %25 = vsyncpa [#allocation18], 0 }
   0x6   :  { %26 = vsyncpa [#allocation4], 0  ;;  %s3209_s18 = smov [#allocation5]   ;;  %s3210_s20 = smov [#allocation8]  }
   0x7   :  { %s43_s19 = sshll.u32 %s3209_s18, 4  ;;  %s62_s21 = sshll.u32 %s3210_s20, 4  ;;  %s44_s19 = int_to_ptr.vmem [resolvable:$true] %s43_s19  ;;  %s3308_s21 = int_to_ptr.vmem [resolvable:$true] %s62_s21 }
   0x8   :  { %s2931_s24 = scalar_lea.hbm %s3799_s1, 128 }
   0x9   :  { %p2932_p0 = scmp.ne.s32.totalorder %s3799_s1, %s2931_s24  ;;  %p2935_p1 = scmp.lt.u32.totalorder %s2931_s24, %s3799_s1 }
   0xb   :  { %p2937_p2 = pnand %p2935_p1, %p2932_p0 }
   0xd   :  { %2940 = shalt.err (!%p2937_p2)
}
   0xe   :  { %s2941_s29 = scalar_lea.vmem %s44_s19, 128  ;;  %p2946_p4 = scmp.lt.s32.totalorder %s44_s19, %s44_s19 }
   0xf   :  { %p2942_p3 = scmp.ne.s32.totalorder %s44_s19, %s2941_s29  ;;  %p2947_p5 = scmp.lt.s32.totalorder %s2941_s29, %s2941_s29 }
  0x11   :  { %p2948_p6 = por %p2947_p5, %p2946_p4 }
  0x13   :  { %p2949_p7 = pnand %p2948_p6, %p2942_p3 }
  0x15   :  { %2952 = shalt.err (!%p2949_p7)
}
  0x16   :  { %46 = dma.hbm_to_vmem [thread:$0]  %s3799_s1, 128, %s44_s19, [#allocation6]  }
  0x17   :  { %s2953_s20 = scalar_lea.hbm %s3801_s3, 1024 }
  0x18   :  { %p2954_p8 = scmp.ne.s32.totalorder %s3801_s3, %s2953_s20  ;;  %p2957_p9 = scmp.lt.u32.totalorder %s2953_s20, %s3801_s3 }
  0x1a   :  { %p2959_p10 = pnand %p2957_p9, %p2954_p8 }
  0x1c   :  { %2962 = shalt.err (!%p2959_p10)
}
  0x1d   :  { %s2963_s26 = scalar_lea.vmem %s3308_s21, 1024  ;;  %p2968_p12 = scmp.lt.s32.totalorder %s3308_s21, %s3308_s21 }
  0x1e   :  { %p2964_p11 = scmp.ne.s32.totalorder %s3308_s21, %s2963_s26  ;;  %p2969_p13 = scmp.lt.s32.totalorder %s2963_s26, %s2963_s26 }
  0x20   :  { %p2970_p0 = por %p2969_p13, %p2968_p12 }
  0x22   :  { %p2971_p1 = pnand %p2970_p0, %p2964_p11 }
  0x24   :  { %2974 = shalt.err (!%p2971_p1)
}
  0x25   :  { %s3814_s1 = smov 64   ;;  %s3212_s19 = smov 4  }
  0x26   :  { %68 = dma.hbm_to_vmem [thread:$0]  %s3801_s3, 1024, %s3308_s21, [#allocation9], %s3814_s1, %s3814_s1, %s3212_s19  }
  0x27   :  { %s3213_s29 = smov [#allocation11]   ;;  %s2975_s18 = scalar_lea.hbm %s3804_s6, 4096 }
  0x28   :  { %s88_s30 = sshll.u32 %s3213_s29, 4  ;;  %p2976_p2 = scmp.ne.s32.totalorder %s3804_s6, %s2975_s18  ;;  %s89_s30 = int_to_ptr.vmem [resolvable:$true] %s88_s30 }
  0x29   :  { %p2979_p3 = scmp.lt.u32.totalorder %s2975_s18, %s3804_s6 }
  0x2b   :  { %p2981_p4 = pnand %p2979_p3, %p2976_p2 }
  0x2d   :  { %2984 = shalt.err (!%p2981_p4)
}
  0x2e   :  { %s2985_s25 = scalar_lea.vmem %s89_s30, 4096  ;;  %p2990_p6 = scmp.lt.s32.totalorder %s89_s30, %s89_s30 }
  0x2f   :  { %p2986_p5 = scmp.ne.s32.totalorder %s89_s30, %s2985_s25  ;;  %p2991_p7 = scmp.lt.s32.totalorder %s2985_s25, %s2985_s25 }
  0x31   :  { %p2992_p8 = por %p2991_p7, %p2990_p6 }
  0x33   :  { %p2993_p9 = pnand %p2992_p8, %p2986_p5 }
  0x35   :  { %2996 = shalt.err (!%p2993_p9)
}
  0x36   :  { %s3214_s3 = smov 256   ;;  %s3215_s21 = smov 16  }
  0x37   :  { %94 = dma.hbm_to_vmem [thread:$0]  %s3804_s6, 4096, %s89_s30, [#allocation12], %s3214_s3, %s3214_s3, %s3215_s21  }
  0x38   :  { %s3216_s28 = smov [#allocation14]   ;;  %s3217_s16 = smov [#allocation17]  }
  0x39   :  { %s114_s29 = sshll.u32 %s3216_s28, 4  ;;  %s140_s17 = sshll.u32 %s3217_s16, 4  ;;  %s115_s29 = int_to_ptr.vmem [resolvable:$true] %s114_s29  ;;  %s141_s17 = int_to_ptr.vmem [resolvable:$true] %s140_s17 }
  0x3a   :  { %s2997_s22 = scalar_lea.hbm %s3807_s9, 4096 }
  0x3b   :  { %p2998_p10 = scmp.ne.s32.totalorder %s3807_s9, %s2997_s22  ;;  %p3001_p11 = scmp.lt.u32.totalorder %s2997_s22, %s3807_s9 }
  0x3d   :  { %p3003_p12 = pnand %p3001_p11, %p2998_p10 }
  0x3f   :  { %3006 = shalt.err (!%p3003_p12)
}
  0x40   :  { %s3007_s6 = scalar_lea.vmem %s115_s29, 4096  ;;  %p3012_p0 = scmp.lt.s32.totalorder %s115_s29, %s115_s29 }
  0x41   :  { %p3008_p13 = scmp.ne.s32.totalorder %s115_s29, %s3007_s6  ;;  %p3013_p1 = scmp.lt.s32.totalorder %s3007_s6, %s3007_s6 }
  0x43   :  { %p3014_p2 = por %p3013_p1, %p3012_p0 }
  0x45   :  { %p3015_p3 = pnand %p3014_p2, %p3008_p13 }
  0x47   :  { %3018 = shalt.err (!%p3015_p3)
}
  0x48   :  { %s3818_s30 = smov 64   ;;  %s3019_s16 = scalar_lea.hbm %s3810_s12, 1024 }
  0x49   :  { %120 = dma.hbm_to_vmem [thread:$0]  %s3807_s9, 4096, %s115_s29, [#allocation15], %s3818_s30, %s3818_s30, %s3212_s19  }
  0x4a   :  { %p3020_p4 = scmp.ne.s32.totalorder %s3810_s12, %s3019_s16  ;;  %p3023_p5 = scmp.lt.u32.totalorder %s3019_s16, %s3810_s12 }
  0x4c   :  { %p3025_p6 = pnand %p3023_p5, %p3020_p4 }
  0x4e   :  { %3028 = shalt.err (!%p3025_p6)
}
  0x4f   :  { %s3029_s24 = scalar_lea.vmem %s141_s17, 1024  ;;  %p3034_p8 = scmp.lt.s32.totalorder %s141_s17, %s141_s17 }
  0x50   :  { %p3030_p7 = scmp.ne.s32.totalorder %s141_s17, %s3029_s24  ;;  %p3035_p9 = scmp.lt.s32.totalorder %s3029_s24, %s3029_s24 }
  0x52   :  { %p3036_p10 = por %p3035_p9, %p3034_p8 }
  0x54   :  { %p3037_p11 = pnand %p3036_p10, %p3030_p7 }
  0x56   :  { %3040 = shalt.err (!%p3037_p11)
}
  0x57   :  { %146 = dma.hbm_to_vmem [thread:$0]  %s3810_s12, 1024, %s141_s17, [#allocation18], %s3818_s30, %s3818_s30, %s3212_s19  }
  0x58   :  { %s3218_s25 = smov [#allocation2]   ;;  %s3219_s26 = smov [#allocation7]  }
  0x59   :  { %s33_s6 = sshll.u32 %s3218_s25, 4  ;;  %s53_s27 = sshll.u32 %s3219_s26, 4  ;;  %s34_s6 = int_to_ptr.vmem [resolvable:$true] %s33_s6  ;;  %s54_s27 = int_to_ptr.vmem [resolvable:$true] %s53_s27 }
  0x5a   :  { %s3041_s16 = scalar_lea.hbm %s3798_s0, 128 }
  0x5b   :  { %p3042_p12 = scmp.ne.s32.totalorder %s3798_s0, %s3041_s16  ;;  %p3045_p13 = scmp.lt.u32.totalorder %s3041_s16, %s3798_s0 }
  0x5d   :  { %p3047_p0 = pnand %p3045_p13, %p3042_p12 }
  0x5f   :  { %3050 = shalt.err (!%p3047_p0)
}
  0x60   :  { %s3051_s12 = scalar_lea.vmem %s34_s6, 128  ;;  %p3056_p2 = scmp.lt.s32.totalorder %s34_s6, %s34_s6 }
  0x61   :  { %p3052_p1 = scmp.ne.s32.totalorder %s34_s6, %s3051_s12  ;;  %p3057_p3 = scmp.lt.s32.totalorder %s3051_s12, %s3051_s12 }
  0x63   :  { %p3058_p4 = por %p3057_p3, %p3056_p2 }
  0x65   :  { %p3059_p5 = pnand %p3058_p4, %p3052_p1 }
  0x67   :  { %3062 = shalt.err (!%p3059_p5)
}
  0x68   :  { %36 = dma.hbm_to_vmem [thread:$0]  %s3798_s0, 128, %s34_s6, [#allocation3]  }
  0x69   :  { %s3063_s25 = scalar_lea.hbm %s3800_s2, 128 }
  0x6a   :  { %p3064_p6 = scmp.ne.s32.totalorder %s3800_s2, %s3063_s25  ;;  %p3067_p7 = scmp.lt.u32.totalorder %s3063_s25, %s3800_s2 }
  0x6c   :  { %p3069_p8 = pnand %p3067_p7, %p3064_p6 }
  0x6e   :  { %3072 = shalt.err (!%p3069_p8)
}
  0x6f   :  { %s3073_s18 = scalar_lea.vmem %s54_s27, 128  ;;  %p3078_p10 = scmp.lt.s32.totalorder %s54_s27, %s54_s27 }
  0x70   :  { %p3074_p9 = scmp.ne.s32.totalorder %s54_s27, %s3073_s18  ;;  %p3079_p11 = scmp.lt.s32.totalorder %s3073_s18, %s3073_s18 }
  0x72   :  { %p3080_p12 = por %p3079_p11, %p3078_p10 }
  0x74   :  { %p3081_p13 = pnand %p3080_p12, %p3074_p9 }
  0x76   :  { %3084 = shalt.err (!%p3081_p13)
}
  0x77   :  { %56 = dma.hbm_to_vmem [thread:$0]  %s3800_s2, 128, %s54_s27, [#allocation6]  }
  0x78   :  { %s3220_s20 = smov [#allocation10]   ;;  %s3221_s23 = smov [#allocation13]  }
  0x79   :  { %s74_s22 = sshll.u32 %s3220_s20, 4  ;;  %s100_s12 = sshll.u32 %s3221_s23, 4  ;;  %s75_s22 = int_to_ptr.vmem [resolvable:$true] %s74_s22  ;;  %s101_s12 = int_to_ptr.vmem [resolvable:$true] %s100_s12 }
  0x7a   :  { %s3085_s9 = scalar_lea.hbm %s3802_s4, 1024 }
  0x7b   :  { %p3086_p0 = scmp.ne.s32.totalorder %s3802_s4, %s3085_s9  ;;  %p3089_p1 = scmp.lt.u32.totalorder %s3085_s9, %s3802_s4 }
  0x7d   :  { %p3091_p2 = pnand %p3089_p1, %p3086_p0 }
  0x7f   :  { %3094 = shalt.err (!%p3091_p2)
}
  0x80   :  { %s3095_s2 = scalar_lea.vmem %s75_s22, 1024  ;;  %p3100_p4 = scmp.lt.s32.totalorder %s75_s22, %s75_s22 }
  0x81   :  { %p3096_p3 = scmp.ne.s32.totalorder %s75_s22, %s3095_s2  ;;  %p3101_p5 = scmp.lt.s32.totalorder %s3095_s2, %s3095_s2 }
  0x83   :  { %p3102_p6 = por %p3101_p5, %p3100_p4 }
  0x85   :  { %p3103_p7 = pnand %p3102_p6, %p3096_p3 }
  0x87   :  { %3106 = shalt.err (!%p3103_p7)
}
  0x88   :  { %80 = dma.hbm_to_vmem [thread:$0]  %s3802_s4, 1024, %s75_s22, [#allocation9], %s3818_s30, %s3818_s30, %s3212_s19  }
  0x89   :  { %s3107_s0 = scalar_lea.hbm %s3805_s7, 4096 }
  0x8a   :  { %p3108_p8 = scmp.ne.s32.totalorder %s3805_s7, %s3107_s0  ;;  %p3111_p9 = scmp.lt.u32.totalorder %s3107_s0, %s3805_s7 }
  0x8c   :  { %p3113_p10 = pnand %p3111_p9, %p3108_p8 }
  0x8e   :  { %3116 = shalt.err (!%p3113_p10)
}
  0x8f   :  { %s3117_s24 = scalar_lea.vmem %s101_s12, 4096  ;;  %p3122_p12 = scmp.lt.s32.totalorder %s101_s12, %s101_s12 }
  0x90   :  { %p3118_p11 = scmp.ne.s32.totalorder %s101_s12, %s3117_s24  ;;  %p3123_p13 = scmp.lt.s32.totalorder %s3117_s24, %s3117_s24 }
  0x92   :  { %p3124_p0 = por %p3123_p13, %p3122_p12 }
  0x94   :  { %p3125_p1 = pnand %p3124_p0, %p3118_p11 }
  0x96   :  { %3128 = shalt.err (!%p3125_p1)
}
  0x97   :  { %106 = dma.hbm_to_vmem [thread:$0]  %s3805_s7, 4096, %s101_s12, [#allocation12], %s3818_s30, %s3818_s30, %s3212_s19  }
  0x98   :  { %s3222_s9 = smov [#allocation16]   ;;  %s3223_s25 = smov [#allocation19]  }
  0x99   :  { %s126_s29 = sshll.u32 %s3222_s9, 4  ;;  %s152_s26 = sshll.u32 %s3223_s25, 4  ;;  %s127_s29 = int_to_ptr.vmem [resolvable:$true] %s126_s29  ;;  %s153_s26 = int_to_ptr.vmem [resolvable:$true] %s152_s26 }
  0x9a   :  { %s3129_s27 = scalar_lea.hbm %s3808_s10, 4096 }
  0x9b   :  { %p3130_p2 = scmp.ne.s32.totalorder %s3808_s10, %s3129_s27  ;;  %p3133_p3 = scmp.lt.u32.totalorder %s3129_s27, %s3808_s10 }
  0x9d   :  { %p3135_p4 = pnand %p3133_p3, %p3130_p2 }
  0x9f   :  { %3138 = shalt.err (!%p3135_p4)
}
  0xa0   :  { %s3139_s7 = scalar_lea.vmem %s127_s29, 4096  ;;  %p3144_p6 = scmp.lt.s32.totalorder %s127_s29, %s127_s29 }
  0xa1   :  { %p3140_p5 = scmp.ne.s32.totalorder %s127_s29, %s3139_s7  ;;  %p3145_p7 = scmp.lt.s32.totalorder %s3139_s7, %s3139_s7 }
  0xa3   :  { %p3146_p8 = por %p3145_p7, %p3144_p6 }
  0xa5   :  { %p3147_p9 = pnand %p3146_p8, %p3140_p5 }
  0xa7   :  { %3150 = shalt.err (!%p3147_p9)
}
  0xa8   :  { %132 = dma.hbm_to_vmem [thread:$0]  %s3808_s10, 4096, %s127_s29, [#allocation15], %s3214_s3, %s3214_s3, %s3215_s21  }
  0xa9   :  { %s3151_s17 = scalar_lea.hbm %s3811_s13, 1024 }
  0xaa   :  { %p3152_p10 = scmp.ne.s32.totalorder %s3811_s13, %s3151_s17  ;;  %p3155_p11 = scmp.lt.u32.totalorder %s3151_s17, %s3811_s13 }
  0xac   :  { %p3157_p12 = pnand %p3155_p11, %p3152_p10 }
  0xae   :  { %3160 = shalt.err (!%p3157_p12)
}
  0xaf   :  { %s3161_s25 = scalar_lea.vmem %s153_s26, 1024  ;;  %p3166_p0 = scmp.lt.s32.totalorder %s153_s26, %s153_s26 }
  0xb0   :  { %p3162_p13 = scmp.ne.s32.totalorder %s153_s26, %s3161_s25  ;;  %p3167_p1 = scmp.lt.s32.totalorder %s3161_s25, %s3161_s25 }
  0xb2   :  { %p3168_p2 = por %p3167_p1, %p3166_p0 }
  0xb4   :  { %p3169_p3 = pnand %p3168_p2, %p3162_p13 }
  0xb6   :  { %3172 = shalt.err (!%p3169_p3)
}
  0xb7   :  { %158 = dma.hbm_to_vmem [thread:$0]  %s3811_s13, 1024, %s153_s26, [#allocation18], %s3818_s30, %s3818_s30, %s3212_s19  }
  0xb8   :  { %3195 = dma.done.wait [#allocation3], 128  }
  0xb9   :  { %3196 = vsyncadd [#allocation3], 4294967168 }
  0xba   :  { %3197 = dma.done.wait [#allocation6], 256  }
  0xbb   :  { %3198 = vsyncadd [#allocation6], 4294967040 }
  0xbc   :  { %3199 = dma.done.wait [#allocation9], 2048  }
  0xbd   :  { %3200 = vsyncadd [#allocation9], 4294965248 }
  0xbe   :  { %3201 = dma.done.wait [#allocation12], 8192  }
  0xbf   :  { %3202 = vsyncadd [#allocation12], 4294959104 }
  0xc0   :  { %3203 = dma.done.wait [#allocation15], 8192  }
  0xc1   :  { %3204 = vsyncadd [#allocation15], 4294959104 }
  0xc2   :  { %3205 = dma.done.wait [#allocation18], 2048  }
  0xc3   :  { %3206 = vsyncadd [#allocation18], 4294965248  ;;  %v3224_v0 = vmov 0.0   ;;  %vm3816_vm0 = vmmov 0   ;;  %v2653_v1 = vld [vmem:[#allocation8] sm:$0xff]   ;;  %v2654_v2 = vld [vmem:[#allocation8 + $0x8] sm:$0xff]  }
  0xc4   :  { %2554 = vmatprep.subr.bf16.mxu0 %v3224_v0  ;;  %2240 = vst [vmem:[#allocation20] sm:$0xff] %v3224_v0  ;;  %2570 = vmatprep.mubr.msk.bf16.mxu0 %vm3816_vm0, %v3224_v0  ;;  %v2655_v3 = vld [vmem:[#allocation8 + $0x10] sm:$0xff]   ;;  %v2656_v4 = vld [vmem:[#allocation8 + $0x18] sm:$0xff]   ;;  %v2657_v5 = vld [vmem:[#allocation8 + $0x20] sm:$0xff]   ;;  %v3226_v31 = vmov 0  }
  0xc5   :  { %2555 = vmatpush3.bf16.msra.mxu0 %v2653_v1  ;;  %v2658_v6 = vld [vmem:[#allocation8 + $0x28] sm:$0xff]   ;;  %v2659_v7 = vld [vmem:[#allocation8 + $0x30] sm:$0xff]   ;;  %v2660_v10 = vld [vmem:[#allocation8 + $0x38] sm:$0xff]   ;;  %603 = vmatprep.mubr.bf16.mxu1 %v3226_v31 }
  0xc6   :  { %2556 = vmatprep.subr.bf16.mxu0 %v3224_v0  ;;  %v195_v8 = vld [vmem:[#allocation2] sm:$0xff]  ;;  %v197_v9 = vld [vmem:[#allocation5] sm:$0xff] }
  0xc7   :  { %v198_v11 = vadd.f32 %v197_v9, %v195_v8  ;;  %v2661_v13 = vld [vmem:[#allocation11 + $0x4] ss:$16 sps:$4 sm:$0xff]   ;;  %v2665_v14 = vld [vmem:[#allocation11 + $0xc] ss:$16 sps:$4 sm:$0xff]   ;;  %v2663_v15 = vld [vmem:[#allocation11 + $0x8] ss:$16 sps:$4 sm:$0xff]  }
  0xc8   :  { %v2666_v16 = vld [vmem:[#allocation11] ss:$16 sps:$4 sm:$0xff]   ;;  %571 = vmatprep.subr.bf16.mxu1 %v2661_v13  ;;  %v2667_v17 = vld [vmem:[#allocation11 + $0x24] ss:$16 sps:$4 sm:$0xff]   ;;  %v2671_v18 = vld [vmem:[#allocation11 + $0x2c] ss:$16 sps:$4 sm:$0xff]  }
  0xc9   :  { %2557 = vmatpush3.bf16.msra.mxu0 %v2654_v2  ;;  %v215_v12 = vpack.c.bf16 %v198_v11, %v195_v8  ;;  %572 = vmatpush1.bf16.msra.mxu1 %v2666_v16  ;;  %v2669_v19 = vld [vmem:[#allocation11 + $0x28] ss:$16 sps:$4 sm:$0xff]   ;;  %v2672_v20 = vld [vmem:[#allocation11 + $0x20] ss:$16 sps:$4 sm:$0xff]   ;;  %v2673_v21 = vld [vmem:[#allocation11 + $0x44] ss:$16 sps:$4 sm:$0xff]  }
  0xca   :  { %2558 = vmatprep.subr.bf16.mxu0 %v3224_v0  ;;  %573 = vmatprep.subr.bf16.mxu1 %v2667_v17  ;;  %v2677_v22 = vld [vmem:[#allocation11 + $0x4c] ss:$16 sps:$4 sm:$0xff]   ;;  %v2675_v23 = vld [vmem:[#allocation11 + $0x48] ss:$16 sps:$4 sm:$0xff]   ;;  %v2678_v24 = vld [vmem:[#allocation11 + $0x40] ss:$16 sps:$4 sm:$0xff]  }
  0xcb   :  { %v2679_v25 = vld [vmem:[#allocation11 + $0x64] ss:$16 sps:$4 sm:$0xff]   ;;  %v2683_v26 = vld [vmem:[#allocation11 + $0x6c] ss:$16 sps:$4 sm:$0xff]   ;;  %v2681_v27 = vld [vmem:[#allocation11 + $0x68] ss:$16 sps:$4 sm:$0xff]  }
  0xcc   :  { %v2684_v28 = vld [vmem:[#allocation11 + $0x60] ss:$16 sps:$4 sm:$0xff]   ;;  %v2685_v29 = vld [vmem:[#allocation11 + $0x84] ss:$16 sps:$4 sm:$0xff]   ;;  %v2689_v30 = vld [vmem:[#allocation11 + $0x8c] ss:$16 sps:$4 sm:$0xff]  }
  0xcd   :  { %2559 = vmatpush3.bf16.msra.mxu0 %v2655_v3  ;;  %574 = vmatpush1.bf16.msra.mxu1 %v2672_v20  ;;  %v2687_v32 = vld [vmem:[#allocation11 + $0x88] ss:$16 sps:$4 sm:$0xff]   ;;  %v2690_v33 = vld [vmem:[#allocation11 + $0x80] ss:$16 sps:$4 sm:$0xff]   ;;  %v2691_v34 = vld [vmem:[#allocation11 + $0xa4] ss:$16 sps:$4 sm:$0xff]  }
  0xce   :  { %2560 = vmatprep.subr.bf16.mxu0 %v3224_v0  ;;  %575 = vmatprep.subr.bf16.mxu1 %v2673_v21  ;;  %v2695_v35 = vld [vmem:[#allocation11 + $0xac] ss:$16 sps:$4 sm:$0xff]   ;;  %v2693_v36 = vld [vmem:[#allocation11 + $0xa8] ss:$16 sps:$4 sm:$0xff]   ;;  %v2696_v37 = vld [vmem:[#allocation11 + $0xa0] ss:$16 sps:$4 sm:$0xff]  }
  0xcf   :  { %v2697_v38 = vld [vmem:[#allocation11 + $0xc4] ss:$16 sps:$4 sm:$0xff]   ;;  %v2701_v39 = vld [vmem:[#allocation11 + $0xcc] ss:$16 sps:$4 sm:$0xff]   ;;  %v2699_v40 = vld [vmem:[#allocation11 + $0xc8] ss:$16 sps:$4 sm:$0xff]  }
  0xd0   :  { %v2702_v41 = vld [vmem:[#allocation11 + $0xc0] ss:$16 sps:$4 sm:$0xff]   ;;  %v2703_v42 = vld [vmem:[#allocation11 + $0xe4] ss:$16 sps:$4 sm:$0xff]   ;;  %v2707_v43 = vld [vmem:[#allocation11 + $0xec] ss:$16 sps:$4 sm:$0xff]  }
  0xd1   :  { %2561 = vmatpush3.bf16.msra.mxu0 %v2656_v4  ;;  %576 = vmatpush1.bf16.msra.mxu1 %v2678_v24  ;;  %v2705_v44 = vld [vmem:[#allocation11 + $0xe8] ss:$16 sps:$4 sm:$0xff]   ;;  %v2708_v45 = vld [vmem:[#allocation11 + $0xe0] ss:$16 sps:$4 sm:$0xff]  }
  0xd2   :  { %2562 = vmatprep.subr.bf16.mxu0 %v3224_v0  ;;  %577 = vmatprep.subr.bf16.mxu1 %v2679_v25  ;;  %v2267_v46 = vld [vmem:[%s3803_s5] ss:$0 sm:$0xff] }
  0xd5   :  { %2563 = vmatpush3.bf16.msra.mxu0 %v2657_v5  ;;  %578 = vmatpush1.bf16.msra.mxu1 %v2684_v28  ;;  %v2710_v28 = vld [vmem:[#allocation14 + $0xc0] sm:$0xff]  }
  0xd6   :  { %2564 = vmatprep.subr.bf16.mxu0 %v3224_v0  ;;  %579 = vmatprep.subr.bf16.mxu1 %v2685_v29  ;;  %v2711_v29 = vld [vmem:[#allocation14] sm:$0xff]  }
  0xd9   :  { %2565 = vmatpush3.bf16.msra.mxu0 %v2658_v6  ;;  %580 = vmatpush1.bf16.msra.mxu1 %v2690_v33  ;;  %v2714_v33 = vld [vmem:[#allocation14 + $0xc8] sm:$0xff]  }
  0xda   :  { %2566 = vmatprep.subr.bf16.mxu0 %v3224_v0  ;;  %581 = vmatprep.subr.bf16.mxu1 %v2691_v34  ;;  %v2715_v34 = vld [vmem:[#allocation14 + $0x8] sm:$0xff]  }
  0xdd   :  { %2567 = vmatpush3.bf16.msra.mxu0 %v2659_v7  ;;  %582 = vmatpush1.bf16.msra.mxu1 %v2696_v37  ;;  %v2718_v37 = vld [vmem:[#allocation14 + $0xd0] sm:$0xff]  }
  0xde   :  { %2568 = vmatprep.subr.bf16.mxu0 %v3224_v0  ;;  %583 = vmatprep.subr.bf16.mxu1 %v2697_v38  ;;  %v2719_v38 = vld [vmem:[#allocation14 + $0x10] sm:$0xff]  }
  0xe1   :  { %2569 = vmatpush3.bf16.msra.mxu0 %v2660_v10  ;;  %584 = vmatpush1.bf16.msra.mxu1 %v2702_v41  ;;  %v2722_v41 = vld [vmem:[#allocation14 + $0xd8] sm:$0xff]  }
  0xe2   :  { %614 = vmatprep.subr.bf16.mxu0 %v2665_v14  ;;  %585 = vmatprep.subr.bf16.mxu1 %v2703_v42  ;;  %v2723_v42 = vld [vmem:[#allocation14 + $0x18] sm:$0xff]  }
  0xe4   :  { %2571 = vmatmul.mubr.bf16.vlgmr.msra.gmra.mrb[0].mxu0 %v215_v12 }
  0xe5   :  { %615 = vmatpush1.bf16.msra.mxu0 %v2663_v15  ;;  %646 = vmatprep.mubr.bf16.mxu0 %v3226_v31 }
  0xe6   :  { %616 = vmatprep.subr.bf16.mxu0 %v2671_v18  ;;  %586 = vmatpush1.bf16.msra.mxu1 %v2708_v45  ;;  %v2726_v45 = vld [vmem:[#allocation14 + $0xe0] sm:$0xff]  }
  0xe9   :  { %617 = vmatpush1.bf16.msra.mxu0 %v2669_v19 }
  0xea   :  { %618 = vmatprep.subr.bf16.mxu0 %v2677_v22 }
  0xed   :  { %619 = vmatpush1.bf16.msra.mxu0 %v2675_v23 }
  0xee   :  { %620 = vmatprep.subr.bf16.mxu0 %v2683_v26 }
  0xf1   :  { %621 = vmatpush1.bf16.msra.mxu0 %v2681_v27  ;;  %v2709_v27 = vld [vmem:[#allocation14 + $0x40] sm:$0xff]  }
  0xf2   :  { %622 = vmatprep.subr.bf16.mxu0 %v2689_v30  ;;  %v2712_v30 = vld [vmem:[#allocation14 + $0x80] sm:$0xff]   ;;  %2439 = vmatprep.subr.bf16.mxu1 %v2709_v27 }
  0xf5   :  { %623 = vmatpush1.bf16.msra.mxu0 %v2687_v32  ;;  %v2713_v32 = vld [vmem:[#allocation14 + $0x48] sm:$0xff]  }
  0xf6   :  { %624 = vmatprep.subr.bf16.mxu0 %v2695_v35  ;;  %v2716_v35 = vld [vmem:[#allocation14 + $0x88] sm:$0xff]  }
  0xf9   :  { %625 = vmatpush1.bf16.msra.mxu0 %v2693_v36  ;;  %v2717_v36 = vld [vmem:[#allocation14 + $0x50] sm:$0xff]  }
  0xfa   :  { %626 = vmatprep.subr.bf16.mxu0 %v2701_v39  ;;  %v2720_v39 = vld [vmem:[#allocation14 + $0x90] sm:$0xff]  }
  0xfd   :  { %627 = vmatpush1.bf16.msra.mxu0 %v2699_v40  ;;  %v2721_v40 = vld [vmem:[#allocation14 + $0x58] sm:$0xff]  }
  0xfe   :  { %628 = vmatprep.subr.bf16.mxu0 %v2707_v43  ;;  %v2724_v43 = vld [vmem:[#allocation14 + $0x98] sm:$0xff]  }
 0x101   :  { %629 = vmatpush1.bf16.msra.mxu0 %v2705_v44  ;;  %v2725_v44 = vld [vmem:[#allocation14 + $0x60] sm:$0xff]  }
 0x102   :  { %2461 = vmatprep.subr.bf16.mxu0 %v2710_v28 }
 0x1b7   :  { %v305_v47 = vpop.f32.mrb[0].mxu0 }
 0x1b8   :  { %v306_v48 = vadd.f32 %v2267_v46, %v305_v47  ;;  %v2572_v49 = vpop.f32.mrb[1].mxu0  ;;  %v2728_v47 = vld [vmem:[#allocation14 + $0xa0] sm:$0xff]  }
 0x1b9   :  { %v308_v50 = vpop.f32.mrb[2].mxu0  ;;  %v2730_v49 = vld [vmem:[#allocation14 + $0xe8] sm:$0xff]  }
 0x1ba   :  { %v312_v51 = vand.u32 2147483647, %v306_v48  ;;  %v309_v52 = vadd.f32 %v2267_v46, %v308_v50  ;;  %v2573_v53 = vpop.f32.mrb[3].mxu0  ;;  %v326_v11 = vmax.f32 %v306_v48, 0.0  ;;  %vm350_vm2 = vcmp.ge.f32.partialorder %v306_v48, 0.0  ;;  %v2727_v46 = vld [vmem:[#allocation14 + $0x20] sm:$0xff]  }
 0x1bb   :  { %vm324_vm5 = vcmp.gt.f32.partialorder %v306_v48, 20.0  ;;  %v2731_v50 = vld [vmem:[#allocation14 + $0x28] sm:$0xff]   ;;  %v2734_v53 = vld [vmem:[#allocation14 + $0xf0] sm:$0xff]  }
 0x1bc   :  { %v314_v54 = vsub.f32 0.0, %v312_v51  ;;  %v313_v55 = vand.u32 2147483647, %v309_v52  ;;  %v327_v14 = vmax.f32 %v309_v52, 0.0  ;;  %vm351_vm4 = vcmp.ge.f32.partialorder %v309_v52, 0.0  ;;  %v2732_v51 = vld [vmem:[#allocation14 + $0xa8] sm:$0xff]  }
 0x1bd   :  { %vm325_vm6 = vcmp.gt.f32.partialorder %v309_v52, 20.0 }
 0x1be   :  { %v316_v56 = vmul.f32 1.442695, %v314_v54  ;;  %v315_v57 = vsub.f32 0.0, %v313_v55  ;;  %v2735_v54 = vld [vmem:[#allocation14 + $0x30] sm:$0xff]  }
 0x1bf   :  { %v2736_v55 = vld [vmem:[#allocation14 + $0xb0] sm:$0xff]  }
 0x1c0   :  { %2845 = vpow2.f32 %v316_v56  ;;  %v318_v58 = vmul.f32 1.442695, %v315_v57  ;;  %v2737_v56 = vld [vmem:[#allocation14 + $0x78] sm:$0xff]  }
 0x1c1   :  { %v2738_v57 = vld [vmem:[#allocation14 + $0xf8] sm:$0xff]  }
 0x1c2   :  { %2847 = vpow2.f32 %v318_v58  ;;  %v2739_v58 = vld [vmem:[#allocation14 + $0x38] sm:$0xff]  }
 0x1ca   :  { %v2846_v59 = vpop.eup %2845 }
 0x1cb   :  { %v320_v60 = vadd.f32 1.0, %v2846_v59  ;;  %v331_v63 = vmul.f32 -0.5, %v2846_v59  ;;  %v334_v3 = vand.u32 2147483647, %v2846_v59 }
 0x1cc   :  { %v2848_v61 = vpop.eup %2847 }
 0x1cd   :  { %v321_v62 = vadd.f32 1.0, %v2848_v61  ;;  %2849 = vlog2.f32 %v320_v60  ;;  %v340_v1 = vmul.f32 -0.5, %v2848_v61  ;;  %v332_v2 = vadd.f32 1.0, %v331_v63 }
 0x1ce   :  { %2851 = vrcp.f32 %v320_v60  ;;  %v343_v6 = vand.u32 2147483647, %v2848_v61  ;;  %vm335_vm1 = vcmp.lt.f32.partialorder %v334_v3, 0.0004427343  ;;  %v391_v60 = vlaneseq }
 0x1cf   :  { %2853 = vlog2.f32 %v321_v62  ;;  %v341_v4 = vadd.f32 1.0, %v340_v1  ;;  %v333_v9 = vmul.f32 %v2846_v59, %v332_v2  ;;  %v389_v1 = vld [vmem:[%s3806_s8] sm:$0xf] }
 0x1d0   :  { %2855 = vrcp.f32 %v321_v62  ;;  %vm344_vm3 = vcmp.lt.f32.partialorder %v343_v6, 0.0004427343 }
 0x1d1   :  { %v342_v17 = vmul.f32 %v2848_v61, %v341_v4 }
 0x1d7   :  { %v2850_v5 = vpop.eup %2849 }
 0x1d8   :  { %v2852_v7 = vpop.eup %2851  ;;  %v330_v8 = vmul.f32 0.6931472, %v2850_v5 }
 0x1d9   :  { %v2854_v10 = vpop.eup %2853  ;;  %v352_v12 = vmul.f32 %v2852_v7, %v2846_v59  ;;  %v2740_v59 = vld [vmem:[#allocation14 + $0xb8] sm:$0xff]  }
 0x1da   :  { %v2856_v13 = vpop.eup %2855  ;;  %v336_v15 = vsel %vm335_vm1, %v333_v9, %v330_v8  ;;  %v339_v16 = vmul.f32 0.6931472, %v2854_v10 }
 0x1db   :  { %v346_v18 = vadd.f32 %v336_v15, %v326_v11  ;;  %v3487_v19 = vsel %vm350_vm2, %v2852_v7, %v352_v12  ;;  %v353_v20 = vmul.f32 %v2856_v13, %v2848_v61  ;;  %v392_v61 = vshrl.u32 %v391_v60, 7 }
 0x1dc   :  { %v345_v21 = vsel %vm344_vm3, %v342_v17, %v339_v16 }
 0x1dd   :  { %v347_v22 = vadd.f32 %v345_v21, %v327_v14  ;;  %v3489_v23 = vsel %vm351_vm4, %v2856_v13, %v353_v20  ;;  %v348_v24 = vsel %vm324_vm5, %v306_v48, %v346_v18  ;;  %v2729_v48 = vld [vmem:[#allocation14 + $0x68] sm:$0xff]   ;;  %v393_v62 = vsub.s32 0, %v392_v61 }
 0x1de   :  { %v401_v63 = vsub.s32 2, %v392_v61  ;;  %v397_v2 = vsub.s32 1, %v392_v61  ;;  %v405_v3 = vsub.s32 3, %v392_v61 }
 0x1df   :  { %v349_v25 = vsel %vm325_vm6, %v309_v52, %v347_v22  ;;  %v2733_v52 = vld [vmem:[#allocation14 + $0x70] sm:$0xff]   ;;  %v394_v4 = vrot.slane %v389_v1, %v393_v62 }
 0x1e0   :  { %v388_v26 = vpack.c.bf16 %v349_v25, %v348_v24  ;;  %v402_v5 = vrot.slane %v389_v1, %v401_v63  ;;  %v398_v6 = vrot.slane %v389_v1, %v397_v2  ;;  %v406_v7 = vrot.slane %v389_v1, %v405_v3 }
 0x1e2   :  { %604 = vmatmul.mubr.bf16.vlgmr.msra.gmra.mrb[0].mxu1 %v388_v26  ;;  %647 = vmatmul.mubr.bf16.vlgmr.msra.gmra.mrb[4].mxu0 %v388_v26 }
 0x1e3   :  { %2440 = vmatpush3.bf16.msra.mxu1 %v2711_v29  ;;  %2462 = vmatpush3.bf16.msra.mxu0 %v2712_v30 }
 0x1e4   :  { %2441 = vmatprep.subr.bf16.mxu1 %v2713_v32  ;;  %2463 = vmatprep.subr.bf16.mxu0 %v2714_v33 }
 0x1e7   :  { %2442 = vmatpush3.bf16.msra.mxu1 %v2715_v34  ;;  %2464 = vmatpush3.bf16.msra.mxu0 %v2716_v35 }
 0x1e8   :  { %2443 = vmatprep.subr.bf16.mxu1 %v2717_v36  ;;  %2465 = vmatprep.subr.bf16.mxu0 %v2718_v37 }
 0x1eb   :  { %2444 = vmatpush3.bf16.msra.mxu1 %v2719_v38  ;;  %2466 = vmatpush3.bf16.msra.mxu0 %v2720_v39 }
 0x1ec   :  { %2445 = vmatprep.subr.bf16.mxu1 %v2721_v40  ;;  %2467 = vmatprep.subr.bf16.mxu0 %v2722_v41 }
 0x1ef   :  { %2446 = vmatpush3.bf16.msra.mxu1 %v2723_v42  ;;  %2468 = vmatpush3.bf16.msra.mxu0 %v2724_v43 }
 0x1f0   :  { %2447 = vmatprep.subr.bf16.mxu1 %v2725_v44  ;;  %2469 = vmatprep.subr.bf16.mxu0 %v2726_v45 }
 0x1f3   :  { %2448 = vmatpush3.bf16.msra.mxu1 %v2727_v46  ;;  %2470 = vmatpush3.bf16.msra.mxu0 %v2728_v47 }
 0x1f4   :  { %2449 = vmatprep.subr.bf16.mxu1 %v2729_v48  ;;  %2471 = vmatprep.subr.bf16.mxu0 %v2730_v49 }
 0x1f7   :  { %2450 = vmatpush3.bf16.msra.mxu1 %v2731_v50  ;;  %2472 = vmatpush3.bf16.msra.mxu0 %v2732_v51 }
 0x1f8   :  { %2451 = vmatprep.subr.bf16.mxu1 %v2733_v52  ;;  %2473 = vmatprep.subr.bf16.mxu0 %v2734_v53 }
 0x1fb   :  { %2452 = vmatpush3.bf16.msra.mxu1 %v2735_v54  ;;  %2474 = vmatpush3.bf16.msra.mxu0 %v2736_v55 }
 0x1fc   :  { %2453 = vmatprep.subr.bf16.mxu1 %v2737_v56  ;;  %2475 = vmatprep.subr.bf16.mxu0 %v2738_v57 }
 0x1ff   :  { %2454 = vmatpush3.bf16.msra.mxu1 %v2739_v58  ;;  %2476 = vmatpush3.bf16.msra.mxu0 %v2740_v59 }
 0x200   :  { %2574 = vmatprep.subr.bf16.mxu1 %v3224_v0  ;;  %2594 = vmatprep.subr.bf16.mxu0 %v3224_v0 }
 0x2b5   :  { %v605_v8 = vpop.f32.mrb[0].mxu1  ;;  %v648_v9 = vpop.f32.mrb[4].mxu0 }
 0x2b6   :  { %v3496_v10 = vadd.f32 %v605_v8, %v394_v4  ;;  %v3498_v11 = vadd.f32 %v648_v9, %v402_v5  ;;  %v607_v0 = vpop.f32.mrb[1].mxu1  ;;  %v650_v12 = vpop.f32.mrb[5].mxu0 }
 0x2b7   :  { %v3500_v13 = vadd.f32 %v607_v0, %v398_v6  ;;  %v3502_v14 = vadd.f32 %v650_v12, %v406_v7  ;;  %v609_v15 = vpop.f32.mrb[2].mxu1  ;;  %v652_v16 = vpop.f32.mrb[6].mxu0 }
 0x2b8   :  { %v657_v17 = vand.u32 2147483647, %v3496_v10  ;;  %v659_v18 = vand.u32 2147483647, %v3498_v11  ;;  %v3508_v22 = vadd.f32 %v609_v15, %v394_v4  ;;  %v3510_v24 = vadd.f32 %v652_v16, %v402_v5  ;;  %v611_v25 = vpop.f32.mrb[3].mxu1  ;;  %v654_v26 = vpop.f32.mrb[7].mxu0 }
 0x2b9   :  { %v658_v20 = vand.u32 2147483647, %v3500_v13  ;;  %v660_v21 = vand.u32 2147483647, %v3502_v14  ;;  %v3512_v29 = vadd.f32 %v611_v25, %v398_v6  ;;  %v3514_v30 = vadd.f32 %v654_v26, %v406_v7 }
 0x2ba   :  { %v665_v27 = vsub.f32 0.0, %v657_v17  ;;  %v667_v28 = vsub.f32 0.0, %v659_v18  ;;  %v661_v34 = vand.u32 2147483647, %v3508_v22  ;;  %v663_v37 = vand.u32 2147483647, %v3510_v24 }
 0x2bb   :  { %v666_v32 = vsub.f32 0.0, %v658_v20  ;;  %v668_v33 = vsub.f32 0.0, %v660_v21  ;;  %v662_v42 = vand.u32 2147483647, %v3512_v29  ;;  %v664_v43 = vand.u32 2147483647, %v3514_v30 }
 0x2bc   :  { %v673_v35 = vmul.f32 1.442695, %v665_v27  ;;  %v677_v36 = vmul.f32 1.442695, %v667_v28  ;;  %v669_v40 = vsub.f32 0.0, %v661_v34  ;;  %v671_v41 = vsub.f32 0.0, %v663_v37 }
 0x2bd   :  { %v675_v38 = vmul.f32 1.442695, %v666_v32  ;;  %v679_v39 = vmul.f32 1.442695, %v668_v33  ;;  %v670_v45 = vsub.f32 0.0, %v662_v42  ;;  %v672_v46 = vsub.f32 0.0, %v664_v43 }
 0x2be   :  { %2857 = vpow2.f32 %v673_v35  ;;  %v681_v44 = vmul.f32 1.442695, %v669_v40  ;;  %v685_v47 = vmul.f32 1.442695, %v671_v41  ;;  %v713_v54 = vmax.f32 %v3496_v10, 0.0 }
 0x2bf   :  { %2859 = vpow2.f32 %v677_v36  ;;  %v683_v48 = vmul.f32 1.442695, %v670_v45  ;;  %v687_v49 = vmul.f32 1.442695, %v672_v46  ;;  %v715_v55 = vmax.f32 %v3498_v11, 0.0 }
 0x2c0   :  { %2861 = vpow2.f32 %v675_v38  ;;  %v717_v56 = vmax.f32 %v3508_v22, 0.0  ;;  %v719_v57 = vmax.f32 %v3510_v24, 0.0  ;;  %v714_v60 = vmax.f32 %v3500_v13, 0.0 }
 0x2c1   :  { %2863 = vpow2.f32 %v679_v39  ;;  %v718_v61 = vmax.f32 %v3512_v29, 0.0  ;;  %v716_v2 = vmax.f32 %v3502_v14, 0.0  ;;  %v720_v5 = vmax.f32 %v3514_v30, 0.0 }
 0x2c2   :  { %2865 = vpow2.f32 %v681_v44  ;;  %vm705_vm12 = vcmp.gt.f32.partialorder %v3496_v10, 20.0  ;;  %vm706_vm13 = vcmp.gt.f32.partialorder %v3500_v13, 20.0  ;;  %vm710_vm14 = vcmp.gt.f32.partialorder %v3512_v29, 20.0 }
 0x2c3   :  { %2867 = vpow2.f32 %v683_v48  ;;  %vm708_vm15 = vcmp.gt.f32.partialorder %v3502_v14, 20.0  ;;  %vm712_vm1 = vcmp.gt.f32.partialorder %v3514_v30, 20.0  ;;  %vm709_vm3 = vcmp.gt.f32.partialorder %v3508_v22, 20.0 }
 0x2c4   :  { %2869 = vpow2.f32 %v687_v49  ;;  %vm707_vm5 = vcmp.gt.f32.partialorder %v3498_v11, 20.0  ;;  %vm711_vm6 = vcmp.gt.f32.partialorder %v3510_v24, 20.0  ;;  %vm810_vm0 = vcmp.ge.f32.partialorder %v3500_v13, 0.0 }
 0x2c5   :  { %2871 = vpow2.f32 %v685_v47 }
 0x2c8   :  { %v3520_v50 = vpop.eup %2857 }
 0x2c9   :  { %v3522_v51 = vpop.eup %2859  ;;  %v3525_v52 = vadd.f32 1.0, %v3520_v50  ;;  %v724_v3 = vmul.f32 -0.5, %v3520_v50  ;;  %v727_v6 = vand.u32 2147483647, %v3520_v50 }
 0x2ca   :  { %v3527_v53 = vpop.eup %2861  ;;  %v691_v9 = vadd.f32 1.0, %v3522_v51  ;;  %v742_v0 = vmul.f32 -0.5, %v3522_v51  ;;  %v745_v33 = vand.u32 2147483647, %v3522_v51 }
 0x2cb   :  { %v3533_v58 = vpop.eup %2863  ;;  %v3536_v59 = vadd.f32 1.0, %v3527_v53  ;;  %2873 = vlog2.f32 %v3525_v52  ;;  %v733_v63 = vmul.f32 -0.5, %v3527_v53  ;;  %v736_v4 = vand.u32 2147483647, %v3527_v53 }
 0x2cc   :  { %v3541_v62 = vpop.eup %2865  ;;  %v3545_v1 = vadd.f32 1.0, %v3533_v58  ;;  %v751_v8 = vmul.f32 -0.5, %v3533_v58  ;;  %v754_v17 = vand.u32 2147483647, %v3533_v58  ;;  %v725_v27 = vadd.f32 1.0, %v724_v3 }
 0x2cd   :  { %2875 = vlog2.f32 %v3536_v59  ;;  %v3553_v7 = vpop.eup %2867  ;;  %v693_v18 = vadd.f32 1.0, %v3541_v62  ;;  %v734_v21 = vadd.f32 1.0, %v733_v63  ;;  %vm3573_vm7 = vcmp.lt.f32.partialorder %v736_v4, 0.0004427343 }
 0x2ce   :  { %2877 = vlog2.f32 %v3545_v1  ;;  %v3559_v12 = vpop.eup %2869  ;;  %v3562_v15 = vadd.f32 1.0, %v3553_v7  ;;  %v769_v16 = vmul.f32 -0.5, %v3553_v7  ;;  %v772_v32 = vand.u32 2147483647, %v3553_v7 }
 0x2cf   :  { %v3567_v20 = vpop.eup %2871  ;;  %v3570_v25 = vadd.f32 1.0, %v3559_v12  ;;  %v787_v26 = vmul.f32 -0.5, %v3559_v12  ;;  %v752_v35 = vadd.f32 1.0, %v751_v8  ;;  %v790_v36 = vand.u32 2147483647, %v3559_v12 }
 0x2d0   :  { %2879 = vlog2.f32 %v3562_v15  ;;  %v770_v34 = vadd.f32 1.0, %v769_v16  ;;  %v760_v38 = vmul.f32 -0.5, %v3541_v62  ;;  %v695_v39 = vadd.f32 1.0, %v3567_v20 }
 0x2d1   :  { %2881 = vlog2.f32 %v3570_v25  ;;  %v788_v37 = vadd.f32 1.0, %v787_v26  ;;  %v735_v40 = vmul.f32 %v3527_v53, %v734_v21  ;;  %vm3585_vm8 = vcmp.lt.f32.partialorder %v754_v17, 0.0004427343 }
 0x2d2   :  { %2883 = vlog2.f32 %v693_v18  ;;  %v726_v42 = vmul.f32 %v3520_v50, %v725_v27  ;;  %vm3590_vm9 = vcmp.lt.f32.partialorder %v772_v32, 0.0004427343  ;;  %vm3594_vm10 = vcmp.lt.f32.partialorder %v727_v6, 0.0004427343 }
 0x2d3   :  { %2885 = vlog2.f32 %v691_v9  ;;  %v763_v46 = vand.u32 2147483647, %v3541_v62  ;;  %v753_v47 = vmul.f32 %v3533_v58, %v752_v35  ;;  %vm3600_vm11 = vcmp.lt.f32.partialorder %v790_v36, 0.0004427343 }
 0x2d4   :  { %2887 = vlog2.f32 %v695_v39  ;;  %v778_v63 = vmul.f32 -0.5, %v3567_v20  ;;  %v771_v4 = vmul.f32 %v3553_v7, %v770_v34  ;;  %v789_v6 = vmul.f32 %v3559_v12, %v788_v37 }
 0x2d5   :  { %v2874_v43 = vpop.eup %2873  ;;  %v761_v8 = vadd.f32 1.0, %v760_v38  ;;  %2889 = vrcp.f32 %v3525_v52  ;;  %v743_v26 = vadd.f32 1.0, %v742_v0  ;;  %vm3615_vm2 = vcmp.lt.f32.partialorder %v763_v46, 0.0004427343 }
 0x2d6   :  { %v723_v49 = vmul.f32 0.6931472, %v2874_v43  ;;  %2891 = vrcp.f32 %v691_v9  ;;  %v781_v52 = vand.u32 2147483647, %v3567_v20  ;;  %vm3624_vm4 = vcmp.lt.f32.partialorder %v745_v33, 0.0004427343 }
 0x2d7   :  { %v2876_v3 = vpop.eup %2875  ;;  %2893 = vrcp.f32 %v3536_v59  ;;  %v779_v9 = vadd.f32 1.0, %v778_v63  ;;  %v762_v37 = vmul.f32 %v3541_v62, %v761_v8 }
 0x2d8   :  { %v2878_v16 = vpop.eup %2877  ;;  %v732_v17 = vmul.f32 0.6931472, %v2876_v3  ;;  %v729_v21 = vsel %vm3594_vm10, %v726_v42, %v723_v49  ;;  %2895 = vrcp.f32 %v3545_v1  ;;  %v744_v1 = vmul.f32 %v3522_v51, %v743_v26 }
 0x2d9   :  { %v750_v27 = vmul.f32 0.6931472, %v2878_v16  ;;  %v793_v59 = vadd.f32 %v729_v21, %v713_v54  ;;  %2897 = vrcp.f32 %v693_v18  ;;  %vm811_vm10 = vcmp.ge.f32.partialorder %v3498_v11, 0.0  ;;  %v2748_v18 = vld [vmem:[#allocation17 + $0x38] sm:$0xff]  }
 0x2da   :  { %v738_v34 = vsel %vm3573_vm7, %v735_v40, %v732_v17  ;;  %v2880_v0 = vpop.eup %2879  ;;  %vm809_vm7 = vcmp.ge.f32.partialorder %v3496_v10, 0.0  ;;  %2899 = vrcp.f32 %v695_v39  ;;  %v780_v43 = vmul.f32 %v3567_v20, %v779_v9 }
 0x2db   :  { %v756_v36 = vsel %vm3585_vm8, %v753_v47, %v750_v27  ;;  %v2882_v28 = vpop.eup %2881  ;;  %v768_v38 = vmul.f32 0.6931472, %v2880_v0  ;;  %v794_v33 = vadd.f32 %v738_v34, %v714_v60  ;;  %vm3642_vm8 = vcmp.lt.f32.partialorder %v781_v52, 0.0004427343 }
 0x2dc   :  { %v2884_v40 = vpop.eup %2883  ;;  %v786_v41 = vmul.f32 0.6931472, %v2882_v28  ;;  %v796_v54 = vadd.f32 %v756_v36, %v716_v2  ;;  %2901 = vrcp.f32 %v3562_v15  ;;  %v801_v15 = vsel %vm705_vm12, %v3496_v10, %v793_v59 }
 0x2dd   :  { %v2886_v60 = vpop.eup %2885  ;;  %v774_v42 = vsel %vm3590_vm9, %v771_v4, %v768_v38  ;;  %v759_v39 = vmul.f32 0.6931472, %v2884_v40  ;;  %2903 = vrcp.f32 %v3570_v25  ;;  %v802_v44 = vsel %vm706_vm13, %v3500_v13, %v794_v33 }
 0x2de   :  { %v2888_v2 = vpop.eup %2887  ;;  %v798_v45 = vadd.f32 %v774_v42, %v718_v61  ;;  %v792_v46 = vsel %vm3600_vm11, %v789_v6, %v786_v41  ;;  %v741_v47 = vmul.f32 0.6931472, %v2886_v60  ;;  %v804_v3 = vsel %vm708_vm15, %v3502_v14, %v796_v54  ;;  %v2741_v41 = vld [vmem:[#allocation17] sm:$0xff]   ;;  %v2744_v54 = vld [vmem:[#allocation17 + $0x18] sm:$0xff]   ;;  %v2308_v42 = vld [vmem:[%s3809_s11] ss:$0 sm:$0xff] }
 0x2df   :  { %v800_v49 = vadd.f32 %v792_v46, %v720_v5  ;;  %v765_v25 = vsel %vm3615_vm2, %v762_v37, %v759_v39  ;;  %v777_v63 = vmul.f32 0.6931472, %v2888_v2  ;;  %v2890_v61 = vpop.eup %2889  ;;  %vm812_vm9 = vcmp.ge.f32.partialorder %v3502_v14, 0.0 }
 0x2e0   :  { %v806_v48 = vsel %vm710_vm14, %v3512_v29, %v798_v45  ;;  %v797_v4 = vadd.f32 %v765_v25, %v717_v56  ;;  %v747_v6 = vsel %vm3624_vm4, %v744_v1, %v741_v47  ;;  %v2892_v5 = vpop.eup %2891  ;;  %v817_v52 = vmul.f32 %v2890_v61, %v3520_v50  ;;  %v3713_v1 = vld [vmem:[#allocation20] sm:$0xff] }
 0x2e1   :  { %v898_v8 = vpack.c.bf16 %v806_v48, %v802_v44  ;;  %v808_v16 = vsel %vm712_vm1, %v3514_v30, %v800_v49  ;;  %v783_v17 = vsel %vm3642_vm8, %v780_v43, %v777_v63  ;;  %v795_v21 = vadd.f32 %v747_v6, %v715_v55  ;;  %v2894_v26 = vpop.eup %2893 }
 0x2e2   :  { %v900_v27 = vpack.c.bf16 %v808_v16, %v804_v3  ;;  %v805_v56 = vsel %vm709_vm3, %v3508_v22, %v797_v4  ;;  %v799_v32 = vadd.f32 %v783_v17, %v719_v57  ;;  %v2896_v34 = vpop.eup %2895  ;;  %v819_v9 = vmul.f32 %v2892_v5, %v3522_v51 }
 0x2e3   :  { %1132 = vmatprep.mubr.bf16.mxu1 %v898_v8  ;;  %v897_v35 = vpack.c.bf16 %v805_v56, %v801_v15  ;;  %v818_v0 = vmul.f32 %v2894_v26, %v3527_v53  ;;  %v2898_v55 = vpop.eup %2897  ;;  %v803_v36 = vsel %vm707_vm5, %v3498_v11, %v795_v21  ;;  %v3701_v50 = vsel %vm809_vm7, %v2890_v61, %v817_v52 }
 0x2e4   :  { %1173 = vmatprep.mubr.bf16.mxu0 %v900_v27  ;;  %v807_v57 = vsel %vm711_vm6, %v3510_v24, %v799_v32  ;;  %v820_v51 = vmul.f32 %v2896_v34, %v3533_v58  ;;  %v2900_v37 = vpop.eup %2899  ;;  %v3706_v59 = vsel %vm811_vm10, %v2892_v5, %v819_v9  ;;  %v821_v38 = vmul.f32 %v2898_v55, %v3541_v62 }
 0x2e5   :  { %1133 = vmatmul.mubr.bf16.vlgmr.msra.gmra.mrb[4].mxu1 %v897_v35  ;;  %v899_v53 = vpack.c.bf16 %v807_v57, %v803_v36  ;;  %v3710_v28 = vsel %vm810_vm0, %v2894_v26, %v818_v0  ;;  %vm3835_vm11 = vmmov 0   ;;  %vm813_vm12 = vcmp.ge.f32.partialorder %v3508_v22, 0.0 }
 0x2e6   :  { %v2902_v33 = vpop.eup %2901  ;;  %2590 = vmatprep.mubr.msk.bf16.mxu1 %vm3835_vm11, %v3713_v1  ;;  %v3719_v10 = vsel %vm812_vm9, %v2896_v34, %v820_v51  ;;  %v823_v11 = vmul.f32 %v2900_v37, %v3567_v20  ;;  %v3723_v13 = vsel %vm813_vm12, %v2898_v55, %v821_v38  ;;  %vm815_vm0 = vcmp.ge.f32.partialorder %v3510_v24, 0.0  ;;  %2575 = vmatpush3.bf16.msra.mxu1 %v2741_v41  ;;  %v2742_v24 = vld [vmem:[#allocation17 + $0x8] sm:$0xff]  }
 0x2e7   :  { %v2904_v58 = vpop.eup %2903  ;;  %1174 = vmatmul.mubr.bf16.vlgmr.msra.gmra.mrb[8].mxu0 %v899_v53  ;;  %v822_v62 = vmul.f32 %v2902_v33, %v3553_v7  ;;  %vm814_vm13 = vcmp.ge.f32.partialorder %v3512_v29, 0.0  ;;  %vm816_vm14 = vcmp.ge.f32.partialorder %v3514_v30, 0.0  ;;  %2576 = vmatprep.subr.bf16.mxu1 %v3713_v1  ;;  %v2743_v7 = vld [vmem:[#allocation17 + $0x10] sm:$0xff]   ;;  %v2745_v29 = vld [vmem:[#allocation17 + $0x20] sm:$0xff]   ;;  %v2746_v30 = vld [vmem:[#allocation17 + $0x28] sm:$0xff]   ;;  %vm2241_vm9 = vcmask 7168  }
 0x2e8   :  { %2610 = vmatprep.mubr.msk.bf16.mxu0 %vm3835_vm11, %v3713_v1  ;;  %v3729_v40 = vsel %vm815_vm0, %v2900_v37, %v823_v11  ;;  %v824_v14 = vmul.f32 %v2904_v58, %v3559_v12  ;;  %v2747_v12 = vld [vmem:[#allocation17 + $0x30] sm:$0xff]   ;;  %vm2243_vm12 = vcmask 15368  }
 0x2e9   :  { %v3733_v22 = vsel %vm814_vm13, %v2902_v33, %v822_v62  ;;  %vm2245_vm13 = vcmask 23568  }
 0x2ea   :  { %v3736_v20 = vsel %vm816_vm14, %v2904_v58, %v824_v14  ;;  %2577 = vmatpush3.bf16.msra.mxu1 %v2742_v24 }
 0x2eb   :  { %2578 = vmatprep.subr.bf16.mxu1 %v3713_v1 }
 0x2ee   :  { %2579 = vmatpush3.bf16.msra.mxu1 %v2743_v7 }
 0x2ef   :  { %2580 = vmatprep.subr.bf16.mxu1 %v3713_v1 }
 0x2f2   :  { %2581 = vmatpush3.bf16.msra.mxu1 %v2744_v54 }
 0x2f3   :  { %2582 = vmatprep.subr.bf16.mxu1 %v3713_v1 }
 0x2f6   :  { %2583 = vmatpush3.bf16.msra.mxu1 %v2745_v29 }
 0x2f7   :  { %2584 = vmatprep.subr.bf16.mxu1 %v3713_v1 }
 0x2fa   :  { %2585 = vmatpush3.bf16.msra.mxu1 %v2746_v30 }
 0x2fb   :  { %2586 = vmatprep.subr.bf16.mxu1 %v3713_v1 }
 0x2fe   :  { %2587 = vmatpush3.bf16.msra.mxu1 %v2747_v12 }
 0x2ff   :  { %2588 = vmatprep.subr.bf16.mxu1 %v3713_v1 }
 0x302   :  { %2589 = vmatpush3.bf16.msra.mxu1 %v2748_v18 }
 0x3b8   :  { %v2455_v60 = vpop.f32.mrb[4].mxu1 }
 0x3b9   :  { %v2456_v39 = vpop.f32.mrb[5].mxu1 }
 0x3ba   :  { %v2477_v43 = vpop.f32.mrb[8].mxu0  ;;  %v2457_v2 = vadd.f32 %v2456_v39, %v2455_v60  ;;  %v2458_v45 = vpop.f32.mrb[6].mxu1  ;;  %v2749_v39 = vld [vmem:[#allocation19] sm:$0xff]  }
 0x3bb   :  { %v2478_v46 = vpop.f32.mrb[9].mxu0  ;;  %v2459_v15 = vpop.f32.mrb[7].mxu1  ;;  %2595 = vmatpush3.bf16.msra.mxu0 %v2749_v39  ;;  %v2771_v39 = vld [vmem:[#allocation16 + $0x44] ss:$16 sps:$4 sm:$0xff]  }
 0x3bc   :  { %v1135_v47 = vadd.f32 %v2457_v2, %v2308_v42  ;;  %v2479_v44 = vadd.f32 %v2478_v46, %v2477_v43  ;;  %v2480_v49 = vpop.f32.mrb[10].mxu0  ;;  %v2460_v25 = vadd.f32 %v2459_v15, %v2458_v45  ;;  %2596 = vmatprep.subr.bf16.mxu0 %v3713_v1  ;;  %v2750_v43 = vld [vmem:[#allocation19 + $0x8] sm:$0xff]   ;;  %v2751_v2 = vld [vmem:[#allocation19 + $0x10] sm:$0xff]   ;;  %v2752_v45 = vld [vmem:[#allocation19 + $0x18] sm:$0xff]  }
 0x3bd   :  { %v2481_v63 = vpop.f32.mrb[11].mxu0  ;;  %v2753_v46 = vld [vmem:[#allocation19 + $0x20] sm:$0xff]   ;;  %v2754_v15 = vld [vmem:[#allocation19 + $0x28] sm:$0xff]  }
 0x3be   :  { %v1176_v61 = vadd.f32 %v2479_v44, %v1135_v47  ;;  %v1138_v48 = vadd.f32 %v2460_v25, %v2308_v42  ;;  %v2482_v3 = vadd.f32 %v2481_v63, %v2480_v49  ;;  %v2755_v47 = vld [vmem:[#allocation19 + $0x30] sm:$0xff]   ;;  %v2756_v44 = vld [vmem:[#allocation19 + $0x38] sm:$0xff]   ;;  %v2341_v49 = vld [vmem:[%s3812_s14] ss:$0 sm:$0xff]  ;;  %s3227_s14 = smov [#allocation20]  }
 0x3bf   :  { %2597 = vmatpush3.bf16.msra.mxu0 %v2750_v43  ;;  %v2774_v43 = vld [vmem:[#allocation16 + $0x4c] ss:$16 sps:$4 sm:$0xff]   ;;  %s2253_s26 = sshll.u32 %s3227_s14, 4  ;;  %s2254_s26 = int_to_ptr.vmem [resolvable:$true] %s2253_s26 }
 0x3c0   :  { %v1182_v4 = vand.u32 2147483647, %v1176_v61  ;;  %v1179_v6 = vadd.f32 %v2482_v3, %v1138_v48  ;;  %v1196_v38 = vmax.f32 %v1176_v61, 0.0  ;;  %vm1220_vm1 = vcmp.ge.f32.partialorder %v1176_v61, 0.0  ;;  %2598 = vmatprep.subr.bf16.mxu0 %v3713_v1  ;;  %s3173_s28 = scalar_lea.vmem %s2254_s26, 128  ;;  %p3178_p5 = scmp.lt.s32.totalorder %s2254_s26, %s2254_s26 }
 0x3c1   :  { %vm1194_vm4 = vcmp.gt.f32.partialorder %v1176_v61, 20.0  ;;  %p3174_p4 = scmp.ne.s32.totalorder %s2254_s26, %s3173_s28  ;;  %p3179_p6 = scmp.lt.s32.totalorder %s3173_s28, %s3173_s28 }
 0x3c2   :  { %v1184_v5 = vsub.f32 0.0, %v1182_v4  ;;  %v1183_v8 = vand.u32 2147483647, %v1179_v6  ;;  %v1197_v58 = vmax.f32 %v1179_v6, 0.0  ;;  %vm1221_vm3 = vcmp.ge.f32.partialorder %v1179_v6, 0.0 }
 0x3c3   :  { %vm1195_vm5 = vcmp.gt.f32.partialorder %v1179_v6, 20.0  ;;  %2599 = vmatpush3.bf16.msra.mxu0 %v2751_v2  ;;  %v2769_v2 = vld [vmem:[#allocation16 + $0x40] ss:$16 sps:$4 sm:$0xff]   ;;  %p3180_p7 = por %p3179_p6, %p3178_p5 }
 0x3c4   :  { %v1186_v16 = vmul.f32 1.442695, %v1184_v5  ;;  %v1185_v17 = vsub.f32 0.0, %v1183_v8  ;;  %2600 = vmatprep.subr.bf16.mxu0 %v3713_v1 }
 0x3c5   :  { %p3181_p8 = pnand %p3180_p7, %p3174_p4 }
 0x3c6   :  { %2905 = vpow2.f32 %v1186_v16  ;;  %v1188_v21 = vmul.f32 1.442695, %v1185_v17 }
 0x3c7   :  { %2601 = vmatpush3.bf16.msra.mxu0 %v2752_v45  ;;  %v2777_v45 = vld [vmem:[#allocation16 + $0x64] ss:$16 sps:$4 sm:$0xff]  }
 0x3c8   :  { %2907 = vpow2.f32 %v1188_v21  ;;  %2602 = vmatprep.subr.bf16.mxu0 %v3713_v1 }
 0x3cb   :  { %2603 = vmatpush3.bf16.msra.mxu0 %v2753_v46  ;;  %v2780_v46 = vld [vmem:[#allocation16 + $0x6c] ss:$16 sps:$4 sm:$0xff]  }
 0x3cc   :  { %2604 = vmatprep.subr.bf16.mxu0 %v3713_v1 }
 0x3cf   :  { %2605 = vmatpush3.bf16.msra.mxu0 %v2754_v15  ;;  %v2775_v15 = vld [vmem:[#allocation16 + $0x60] ss:$16 sps:$4 sm:$0xff]  }
 0x3d0   :  { %v2906_v26 = vpop.eup %2905  ;;  %2606 = vmatprep.subr.bf16.mxu0 %v3713_v1 }
 0x3d1   :  { %v1190_v27 = vadd.f32 1.0, %v2906_v26  ;;  %v1201_v52 = vmul.f32 -0.5, %v2906_v26  ;;  %v1204_v9 = vand.u32 2147483647, %v2906_v26 }
 0x3d2   :  { %v2908_v56 = vpop.eup %2907 }
 0x3d3   :  { %v1191_v32 = vadd.f32 1.0, %v2908_v56  ;;  %2909 = vlog2.f32 %v1190_v27  ;;  %v1210_v34 = vmul.f32 -0.5, %v2908_v56  ;;  %v1202_v35 = vadd.f32 1.0, %v1201_v52  ;;  %2607 = vmatpush3.bf16.msra.mxu0 %v2755_v47  ;;  %v2778_v47 = vld [vmem:[#allocation16 + $0x68] ss:$16 sps:$4 sm:$0xff]  }
 0x3d4   :  { %2911 = vrcp.f32 %v1190_v27  ;;  %v1213_v36 = vand.u32 2147483647, %v2908_v56  ;;  %vm1205_vm15 = vcmp.lt.f32.partialorder %v1204_v9, 0.0004427343  ;;  %2608 = vmatprep.subr.bf16.mxu0 %v3713_v1 }
 0x3d5   :  { %2913 = vlog2.f32 %v1191_v32  ;;  %v1211_v0 = vadd.f32 1.0, %v1210_v34  ;;  %v1203_v37 = vmul.f32 %v2906_v26, %v1202_v35 }
 0x3d6   :  { %2915 = vrcp.f32 %v1191_v32  ;;  %vm1214_vm2 = vcmp.lt.f32.partialorder %v1213_v36, 0.0004427343 }
 0x3d7   :  { %v1212_v41 = vmul.f32 %v2908_v56, %v1211_v0  ;;  %2609 = vmatpush3.bf16.msra.mxu0 %v2756_v44  ;;  %v2783_v44 = vld [vmem:[#allocation16 + $0x84] ss:$16 sps:$4 sm:$0xff]  }
 0x3dd   :  { %v2910_v55 = vpop.eup %2909 }
 0x3de   :  { %v2912_v57 = vpop.eup %2911  ;;  %v1200_v51 = vmul.f32 0.6931472, %v2910_v55 }
 0x3df   :  { %v2914_v53 = vpop.eup %2913  ;;  %v1222_v33 = vmul.f32 %v2912_v57, %v2906_v26 }
 0x3e0   :  { %v2916_v11 = vpop.eup %2915  ;;  %v1206_v62 = vsel %vm1205_vm15, %v1203_v37, %v1200_v51  ;;  %v1209_v14 = vmul.f32 0.6931472, %v2914_v53 }
 0x3e1   :  { %v1216_v24 = vadd.f32 %v1206_v62, %v1196_v38  ;;  %v3748_v7 = vsel %vm1220_vm1, %v2912_v57, %v1222_v33  ;;  %v1223_v54 = vmul.f32 %v2916_v11, %v2908_v56 }
 0x3e2   :  { %v1215_v29 = vsel %vm1214_vm2, %v1212_v41, %v1209_v14  ;;  %v2757_v41 = vld [vmem:[#allocation16] ss:$16 sps:$4 sm:$0xff]  }
 0x3e3   :  { %v1217_v30 = vadd.f32 %v1215_v29, %v1197_v58  ;;  %v3750_v12 = vsel %vm1221_vm3, %v2916_v11, %v1223_v54  ;;  %v1218_v18 = vsel %vm1194_vm4, %v1176_v61, %v1216_v24  ;;  %v2759_v24 = vld [vmem:[#allocation16 + $0x4] ss:$16 sps:$4 sm:$0xff]   ;;  %v2760_v54 = vld [vmem:[#allocation16 + $0x8] ss:$16 sps:$4 sm:$0xff]   ;;  %v2762_v29 = vld [vmem:[#allocation16 + $0xc] ss:$16 sps:$4 sm:$0xff]  }
 0x3e4   :  { %1671 = vmatprep.subr.bf16.mxu1 %v2759_v24  ;;  %1714 = vmatprep.subr.bf16.mxu0 %v2762_v29  ;;  %v2820_v24 = vld [vmem:[#allocation13 + $0x98] sm:$0xff]   ;;  %v2822_v29 = vld [vmem:[#allocation13 + $0xe0] sm:$0xff]  }
 0x3e5   :  { %v1219_v60 = vsel %vm1195_vm5, %v1179_v6, %v1217_v30  ;;  %v2765_v30 = vld [vmem:[#allocation16 + $0x24] ss:$16 sps:$4 sm:$0xff]  }
 0x3e6   :  { %v1242_v42 = vpack.c.bf16 %v1219_v60, %v1218_v18  ;;  %v2768_v18 = vld [vmem:[#allocation16 + $0x2c] ss:$16 sps:$4 sm:$0xff]   ;;  %v2763_v60 = vld [vmem:[#allocation16 + $0x20] ss:$16 sps:$4 sm:$0xff]  }
 0x3e8   :  { %2591 = vmatmul.mubr.bf16.vlgmr.msra.gmra.mrb[8].mxu1 %v1242_v42  ;;  %v2766_v42 = vld [vmem:[#allocation16 + $0x28] ss:$16 sps:$4 sm:$0xff]  }
 0x3e9   :  { %1703 = vmatprep.mubr.bf16.mxu1 %v3226_v31  ;;  %1672 = vmatpush1.bf16.msra.mxu1 %v2757_v41  ;;  %v2819_v41 = vld [vmem:[#allocation13 + $0x18] sm:$0xff]  }
 0x3ea   :  { %1673 = vmatprep.subr.bf16.mxu1 %v2765_v30  ;;  %v2823_v30 = vld [vmem:[#allocation13 + $0x20] sm:$0xff]  }
 0x3ed   :  { %1674 = vmatpush1.bf16.msra.mxu1 %v2763_v60  ;;  %v2825_v60 = vld [vmem:[#allocation13 + $0x68] sm:$0xff]  }
 0x3ee   :  { %1675 = vmatprep.subr.bf16.mxu1 %v2771_v39  ;;  %v2827_v39 = vld [vmem:[#allocation13 + $0x28] sm:$0xff]  }
 0x3f1   :  { %1676 = vmatpush1.bf16.msra.mxu1 %v2769_v2  ;;  %v2829_v2 = vld [vmem:[#allocation13 + $0x70] sm:$0xff]  }
 0x3f2   :  { %1677 = vmatprep.subr.bf16.mxu1 %v2777_v45  ;;  %v2831_v45 = vld [vmem:[#allocation13 + $0x30] sm:$0xff]  }
 0x3f5   :  { %1678 = vmatpush1.bf16.msra.mxu1 %v2775_v15  ;;  %v2833_v15 = vld [vmem:[#allocation13 + $0x78] sm:$0xff]  }
 0x3f6   :  { %1679 = vmatprep.subr.bf16.mxu1 %v2783_v44  ;;  %v2835_v44 = vld [vmem:[#allocation13 + $0x38] sm:$0xff]  }
 0x4bb   :  { %v1332_v25 = vpop.f32.mrb[8].mxu1 }
 0x4bc   :  { %v1333_v63 = vadd.f32 %v2341_v49, %v1332_v25  ;;  %v2592_v61 = vpop.f32.mrb[9].mxu1  ;;  %v2781_v25 = vld [vmem:[#allocation16 + $0x80] ss:$16 sps:$4 sm:$0xff]  }
 0x4bd   :  { %v1335_v48 = vpop.f32.mrb[10].mxu1  ;;  %v2789_v61 = vld [vmem:[#allocation16 + $0xa4] ss:$16 sps:$4 sm:$0xff]   ;;  %1680 = vmatpush1.bf16.msra.mxu1 %v2781_v25 }
 0x4be   :  { %v1339_v3 = vand.u32 2147483647, %v1333_v63  ;;  %v1336_v4 = vadd.f32 %v2341_v49, %v1335_v48  ;;  %v2593_v6 = vpop.f32.mrb[11].mxu1  ;;  %v1358_v53 = vmax.f32 %v1333_v63, 0.0  ;;  %vm1351_vm7 = vcmp.ge.f32.partialorder %v1333_v63, 0.0  ;;  %1681 = vmatprep.subr.bf16.mxu1 %v2789_v61 }
 0x4bf   :  { %vm1357_vm10 = vcmp.gt.f32.partialorder %v1333_v63, 20.0  ;;  %v2786_v49 = vld [vmem:[#allocation16 + $0x8c] ss:$16 sps:$4 sm:$0xff]   ;;  %v2795_v6 = vld [vmem:[#allocation16 + $0xc4] ss:$16 sps:$4 sm:$0xff]  }
 0x4c0   :  { %v1341_v5 = vsub.f32 0.0, %v1339_v3  ;;  %v1340_v8 = vand.u32 2147483647, %v1336_v4  ;;  %vm1352_vm8 = vcmp.ge.f32.partialorder %v1336_v4, 0.0  ;;  %v2792_v48 = vld [vmem:[#allocation16 + $0xac] ss:$16 sps:$4 sm:$0xff]  }
 0x4c1   :  { %v2787_v3 = vld [vmem:[#allocation16 + $0xa0] ss:$16 sps:$4 sm:$0xff]   ;;  %v2790_v4 = vld [vmem:[#allocation16 + $0xa8] ss:$16 sps:$4 sm:$0xff]  }
 0x4c2   :  { %v1343_v16 = vmul.f32 1.442695, %v1341_v5  ;;  %v1342_v17 = vsub.f32 0.0, %v1340_v8  ;;  %v2798_v5 = vld [vmem:[#allocation16 + $0xcc] ss:$16 sps:$4 sm:$0xff]   ;;  %1682 = vmatpush1.bf16.msra.mxu1 %v2787_v3 }
 0x4c3   :  { %v2793_v8 = vld [vmem:[#allocation16 + $0xc0] ss:$16 sps:$4 sm:$0xff]   ;;  %1683 = vmatprep.subr.bf16.mxu1 %v2795_v6 }
 0x4c4   :  { %2917 = vpow2.f32 %v1343_v16  ;;  %v1345_v21 = vmul.f32 1.442695, %v1342_v17  ;;  %v2796_v16 = vld [vmem:[#allocation16 + $0xc8] ss:$16 sps:$4 sm:$0xff]   ;;  %v2799_v17 = vld [vmem:[#allocation16 + $0xe0] ss:$16 sps:$4 sm:$0xff]  }
 0x4c6   :  { %2919 = vpow2.f32 %v1345_v21  ;;  %1684 = vmatpush1.bf16.msra.mxu1 %v2793_v8  ;;  %v2801_v21 = vld [vmem:[#allocation16 + $0xe4] ss:$16 sps:$4 sm:$0xff]  }
 0x4c7   :  { %1685 = vmatprep.subr.bf16.mxu1 %v2801_v21 }
 0x4ca   :  { %1686 = vmatpush1.bf16.msra.mxu1 %v2799_v17 }
 0x4ce   :  { %v2918_v26 = vpop.eup %2917 }
 0x4cf   :  { %v1347_v27 = vadd.f32 1.0, %v2918_v26  ;;  %v1362_v52 = vmul.f32 -0.5, %v2918_v26  ;;  %v1365_v35 = vand.u32 2147483647, %v2918_v26 }
 0x4d0   :  { %v2920_v56 = vpop.eup %2919 }
 0x4d1   :  { %v1348_v32 = vadd.f32 1.0, %v2920_v56  ;;  %2921 = vrcp.f32 %v1347_v27  ;;  %v1363_v34 = vadd.f32 1.0, %v1362_v52  ;;  %vm1366_vm6 = vcmp.lt.f32.partialorder %v1365_v35, 0.0004427343 }
 0x4d2   :  { %2923 = vlog2.f32 %v1347_v27  ;;  %v2804_v27 = vld [vmem:[#allocation16 + $0xec] ss:$16 sps:$4 sm:$0xff]  }
 0x4d3   :  { %2925 = vrcp.f32 %v1348_v32  ;;  %v1364_v51 = vmul.f32 %v2918_v26, %v1363_v34  ;;  %v2806_v32 = vld [vmem:[#allocation13 + $0xc0] sm:$0xff]  }
 0x4db   :  { %v2922_v9 = vpop.eup %2921 }
 0x4dc   :  { %v2924_v0 = vpop.eup %2923  ;;  %v1353_v55 = vmul.f32 %v2922_v9, %v2918_v26  ;;  %v2802_v26 = vld [vmem:[#allocation16 + $0xe8] ss:$16 sps:$4 sm:$0xff]  }
 0x4dd   :  { %v2926_v36 = vpop.eup %2925  ;;  %v1361_v57 = vmul.f32 0.6931472, %v2924_v0 }
 0x4de   :  { %v1354_v37 = vmul.f32 %v2926_v36, %v2920_v56  ;;  %v1355_v33 = vsel %vm1351_vm7, %v2922_v9, %v1353_v55  ;;  %v2805_v56 = vld [vmem:[#allocation13 + $0x40] sm:$0xff]  }
 0x4df   :  { %v1367_v38 = vsel %vm1366_vm6, %v1364_v51, %v1361_v57  ;;  %2501 = vmatprep.subr.bf16.mxu1 %v2805_v56  ;;  %v2808_v57 = vld [vmem:[#allocation13 + $0x80] sm:$0xff]  }
 0x4e0   :  { %v1356_v11 = vsel %vm1352_vm8, %v2926_v36, %v1354_v37  ;;  %v1368_v58 = vadd.f32 %v1367_v38, %v1358_v53  ;;  %v2807_v36 = vld [vmem:[#allocation13] sm:$0xff]   ;;  %v2809_v37 = vld [vmem:[#allocation13 + $0x48] sm:$0xff]  }
 0x4e1   :  { %v1386_v62 = vpack.c.bf16 %v1356_v11, %v1355_v33  ;;  %v2810_v53 = vld [vmem:[#allocation13 + $0xc8] sm:$0xff]   ;;  %v2813_v11 = vld [vmem:[#allocation13 + $0x50] sm:$0xff]  }
 0x4e2   :  { %v1369_v14 = vsel %vm1357_vm10, %v1333_v63, %v1368_v58  ;;  %v2784_v63 = vld [vmem:[#allocation16 + $0x88] ss:$16 sps:$4 sm:$0xff]   ;;  %v2815_v58 = vld [vmem:[#allocation13 + $0x10] sm:$0xff]  }
 0x4e3   :  { %2225 = vadd.xlane.f32.xlu1 %v1369_v14  ;;  %2611 = vmatmul.mubr.bf16.vlgmr.msra.gmra.mrb[12].mxu0 %v1386_v62  ;;  %v2811_v38 = vld [vmem:[#allocation13 + $0x8] sm:$0xff]   ;;  %v2817_v62 = vld [vmem:[#allocation13 + $0x58] sm:$0xff]  }
 0x4e4   :  { %1746 = vmatprep.mubr.bf16.mxu0 %v3226_v31  ;;  %1715 = vmatpush1.bf16.msra.mxu0 %v2760_v54  ;;  %v2772_v31 = vld [vmem:[#allocation16 + $0x48] ss:$16 sps:$4 sm:$0xff]   ;;  %v2821_v54 = vld [vmem:[#allocation13 + $0x60] sm:$0xff]  }
 0x4e5   :  { %1716 = vmatprep.subr.bf16.mxu0 %v2768_v18  ;;  %v2812_v33 = vld [vmem:[#allocation13 + $0x88] sm:$0xff]   ;;  %v2818_v14 = vld [vmem:[#allocation13 + $0xd8] sm:$0xff]   ;;  %v2824_v18 = vld [vmem:[#allocation13 + $0xa0] sm:$0xff]  }
 0x4e8   :  { %1717 = vmatpush1.bf16.msra.mxu0 %v2766_v42  ;;  %v2826_v42 = vld [vmem:[#allocation13 + $0xe8] sm:$0xff]  }
 0x4e9   :  { %1718 = vmatprep.subr.bf16.mxu0 %v2774_v43  ;;  %v2828_v43 = vld [vmem:[#allocation13 + $0xa8] sm:$0xff]  }
 0x4ec   :  { %1719 = vmatpush1.bf16.msra.mxu0 %v2772_v31  ;;  %v2830_v31 = vld [vmem:[#allocation13 + $0xf0] sm:$0xff]  }
 0x4ed   :  { %1720 = vmatprep.subr.bf16.mxu0 %v2780_v46  ;;  %v2832_v46 = vld [vmem:[#allocation13 + $0xb0] sm:$0xff]  }
 0x4f0   :  { %1721 = vmatpush1.bf16.msra.mxu0 %v2778_v47  ;;  %v2834_v47 = vld [vmem:[#allocation13 + $0xf8] sm:$0xff]  }
 0x4f1   :  { %1722 = vmatprep.subr.bf16.mxu0 %v2786_v49  ;;  %v2836_v49 = vld [vmem:[#allocation13 + $0xb8] sm:$0xff]  }
 0x4f4   :  { %1723 = vmatpush1.bf16.msra.mxu0 %v2784_v63 }
 0x4f5   :  { %1724 = vmatprep.subr.bf16.mxu0 %v2792_v48 }
 0x4f8   :  { %1725 = vmatpush1.bf16.msra.mxu0 %v2790_v4 }
 0x4f9   :  { %1726 = vmatprep.subr.bf16.mxu0 %v2798_v5 }
 0x4fc   :  { %1727 = vmatpush1.bf16.msra.mxu0 %v2796_v16 }
 0x4fd   :  { %1728 = vmatprep.subr.bf16.mxu0 %v2804_v27 }
 0x500   :  { %1729 = vmatpush1.bf16.msra.mxu0 %v2802_v26 }
 0x501   :  { %2523 = vmatprep.subr.bf16.mxu0 %v2806_v32 }
 0x5b6   :  { %v1469_v52 = vpop.f32.mrb[12].mxu0 }
 0x5b7   :  { %v1476_v34 = vmul.f32 %v1469_v52, %v3748_v7  ;;  %v2612_v35 = vpop.f32.mrb[13].mxu0  ;;  %v2814_v7 = vld [vmem:[#allocation13 + $0xd0] sm:$0xff]  }
 0x5b8   :  { %v1472_v9 = vpop.f32.mrb[14].mxu0  ;;  %v2837_v35 = vld [vmem:[#allocation10] sm:$0xff]  }
 0x5b9   :  { %v1477_v0 = vmul.f32 %v1472_v9, %v3750_v12  ;;  %v2613_v55 = vpop.f32.mrb[15].mxu0  ;;  %v2816_v12 = vld [vmem:[#allocation13 + $0x90] sm:$0xff]   ;;  %v2844_v9 = vld [vmem:[#allocation10 + $0x38] sm:$0xff]  }
 0x5bb   :  { %v1510_v51 = vpack.c.bf16 %v1477_v0, %v1476_v34 }
 0x5bd   :  { %1704 = vmatmul.mubr.bf16.vlgmr.msra.gmra.mrb[12].mxu1 %v1510_v51  ;;  %1747 = vmatmul.mubr.bf16.vlgmr.msra.gmra.mrb[16].mxu0 %v1510_v51 }
 0x5be   :  { %2502 = vmatpush3.bf16.msra.mxu1 %v2807_v36  ;;  %2524 = vmatpush3.bf16.msra.mxu0 %v2808_v57 }
 0x5bf   :  { %2503 = vmatprep.subr.bf16.mxu1 %v2809_v37  ;;  %2525 = vmatprep.subr.bf16.mxu0 %v2810_v53 }
 0x5c2   :  { %2504 = vmatpush3.bf16.msra.mxu1 %v2811_v38  ;;  %2526 = vmatpush3.bf16.msra.mxu0 %v2812_v33 }
 0x5c3   :  { %2505 = vmatprep.subr.bf16.mxu1 %v2813_v11  ;;  %2527 = vmatprep.subr.bf16.mxu0 %v2814_v7 }
 0x5c6   :  { %2506 = vmatpush3.bf16.msra.mxu1 %v2815_v58  ;;  %2528 = vmatpush3.bf16.msra.mxu0 %v2816_v12 }
 0x5c7   :  { %2507 = vmatprep.subr.bf16.mxu1 %v2817_v62  ;;  %2529 = vmatprep.subr.bf16.mxu0 %v2818_v14 }
 0x5ca   :  { %2508 = vmatpush3.bf16.msra.mxu1 %v2819_v41  ;;  %2530 = vmatpush3.bf16.msra.mxu0 %v2820_v24  ;;  %v196_v24 = vld [vmem:[#allocation7] sm:$0xff] }
 0x5cb   :  { %2509 = vmatprep.subr.bf16.mxu1 %v2821_v54  ;;  %2531 = vmatprep.subr.bf16.mxu0 %v2822_v29 }
 0x5ce   :  { %2510 = vmatpush3.bf16.msra.mxu1 %v2823_v30  ;;  %2532 = vmatpush3.bf16.msra.mxu0 %v2824_v18 }
 0x5cf   :  { %2511 = vmatprep.subr.bf16.mxu1 %v2825_v60  ;;  %2533 = vmatprep.subr.bf16.mxu0 %v2826_v42 }
 0x5d2   :  { %2512 = vmatpush3.bf16.msra.mxu1 %v2827_v39  ;;  %2534 = vmatpush3.bf16.msra.mxu0 %v2828_v43  ;;  %v2930_v39 = vld [vmem:[#allocation2] sm:$0xff] }
 0x5d3   :  { %2513 = vmatprep.subr.bf16.mxu1 %v2829_v2  ;;  %2535 = vmatprep.subr.bf16.mxu0 %v2830_v31  ;;  %v2220_v2 = vsub.f32 %v2930_v39, %v196_v24 }
 0x5d6   :  { %2514 = vmatpush3.bf16.msra.mxu1 %v2831_v45  ;;  %2536 = vmatpush3.bf16.msra.mxu0 %v2832_v46 }
 0x5d7   :  { %2515 = vmatprep.subr.bf16.mxu1 %v2833_v15  ;;  %2537 = vmatprep.subr.bf16.mxu0 %v2834_v47 }
 0x5da   :  { %2516 = vmatpush3.bf16.msra.mxu1 %v2835_v44  ;;  %2538 = vmatpush3.bf16.msra.mxu0 %v2836_v49  ;;  %v2226_v44 = vpop.xlane.xlu1 %2225 }
 0x5db   :  { %2614 = vmatprep.subr.bf16.mxu1 %v3713_v1 }
 0x690   :  { %v1705_v25 = vpop.f32.mrb[12].mxu1  ;;  %v1748_v63 = vpop.f32.mrb[16].mxu0 }
 0x691   :  { %v1757_v61 = vmul.f32 %v1705_v25, %v3701_v50  ;;  %v1759_v48 = vmul.f32 %v1748_v63, %v3706_v59  ;;  %v1707_v3 = vpop.f32.mrb[13].mxu1  ;;  %v1750_v4 = vpop.f32.mrb[17].mxu0 }
 0x692   :  { %v1758_v6 = vmul.f32 %v1707_v3, %v3710_v28  ;;  %v1760_v5 = vmul.f32 %v1750_v4, %v3719_v10  ;;  %v1709_v8 = vpop.f32.mrb[14].mxu1  ;;  %v1752_v16 = vpop.f32.mrb[18].mxu0  ;;  %v2838_v28 = vld [vmem:[#allocation10 + $0x8] sm:$0xff]   ;;  %v2839_v10 = vld [vmem:[#allocation10 + $0x10] sm:$0xff]  }
 0x693   :  { %v1761_v17 = vmul.f32 %v1709_v8, %v3723_v13  ;;  %v1763_v21 = vmul.f32 %v1752_v16, %v3729_v40  ;;  %v1711_v26 = vpop.f32.mrb[15].mxu1  ;;  %v1754_v27 = vpop.f32.mrb[19].mxu0  ;;  %v2840_v13 = vld [vmem:[#allocation10 + $0x18] sm:$0xff]   ;;  %v2841_v40 = vld [vmem:[#allocation10 + $0x20] sm:$0xff]  }
 0x694   :  { %v1762_v56 = vmul.f32 %v1711_v26, %v3733_v22  ;;  %v1764_v50 = vmul.f32 %v1754_v27, %v3736_v20  ;;  %v2842_v22 = vld [vmem:[#allocation10 + $0x28] sm:$0xff]   ;;  %v2843_v20 = vld [vmem:[#allocation10 + $0x30] sm:$0xff]  }
 0x695   :  { %v1829_v32 = vpack.c.bf16 %v1761_v17, %v1757_v61  ;;  %v1831_v59 = vpack.c.bf16 %v1763_v21, %v1759_v48 }
 0x696   :  { %v1830_v52 = vpack.c.bf16 %v1762_v56, %v1758_v6  ;;  %v1832_v34 = vpack.c.bf16 %v1764_v50, %v1760_v5 }
 0x698   :  { %2057 = vmatprep.mubr.bf16.mxu1 %v1830_v52  ;;  %2098 = vmatprep.mubr.bf16.mxu0 %v1832_v34 }
 0x699   :  { %2058 = vmatmul.mubr.bf16.vlgmr.msra.gmra.mrb[16].mxu1 %v1829_v32  ;;  %2099 = vmatmul.mubr.bf16.vlgmr.msra.gmra.mrb[20].mxu0 %v1831_v59 }
 0x69a   :  { %2615 = vmatpush3.bf16.msra.mxu1 %v2837_v35  ;;  %2630 = vmatprep.mubr.msk.bf16.mxu1 %vm3835_vm11, %v3713_v1 }
 0x69b   :  { %2616 = vmatprep.subr.bf16.mxu1 %v3713_v1 }
 0x69e   :  { %2617 = vmatpush3.bf16.msra.mxu1 %v2838_v28 }
 0x69f   :  { %2618 = vmatprep.subr.bf16.mxu1 %v3713_v1 }
 0x6a2   :  { %2619 = vmatpush3.bf16.msra.mxu1 %v2839_v10 }
 0x6a3   :  { %2620 = vmatprep.subr.bf16.mxu1 %v3713_v1 }
 0x6a6   :  { %2621 = vmatpush3.bf16.msra.mxu1 %v2840_v13 }
 0x6a7   :  { %2622 = vmatprep.subr.bf16.mxu1 %v3713_v1 }
 0x6aa   :  { %2623 = vmatpush3.bf16.msra.mxu1 %v2841_v40 }
 0x6ab   :  { %2624 = vmatprep.subr.bf16.mxu1 %v3713_v1 }
 0x6ae   :  { %2625 = vmatpush3.bf16.msra.mxu1 %v2842_v22 }
 0x6af   :  { %2626 = vmatprep.subr.bf16.mxu1 %v3713_v1 }
 0x6b2   :  { %2627 = vmatpush3.bf16.msra.mxu1 %v2843_v20 }
 0x6b3   :  { %2628 = vmatprep.subr.bf16.mxu1 %v3713_v1 }
 0x6b6   :  { %2629 = vmatpush3.bf16.msra.mxu1 %v2844_v9 }
 0x76c   :  { %v2517_v0 = vpop.f32.mrb[16].mxu1  ;;  %v2539_v55 = vpop.f32.mrb[20].mxu0 }
 0x76d   :  { %v2518_v36 = vpop.f32.mrb[17].mxu1  ;;  %v2540_v57 = vpop.f32.mrb[21].mxu0 }
 0x76e   :  { %v2519_v51 = vadd.f32 %v2518_v36, %v2517_v0  ;;  %v2541_v37 = vadd.f32 %v2540_v57, %v2539_v55  ;;  %v2520_v53 = vpop.f32.mrb[18].mxu1  ;;  %v2542_v38 = vpop.f32.mrb[22].mxu0 }
 0x76f   :  { %v2521_v33 = vpop.f32.mrb[19].mxu1  ;;  %v2543_v11 = vpop.f32.mrb[23].mxu0 }
 0x770   :  { %v2101_v7 = vadd.f32 %v2541_v37, %v2519_v51  ;;  %v2522_v58 = vadd.f32 %v2521_v33, %v2520_v53  ;;  %v2544_v12 = vadd.f32 %v2543_v11, %v2542_v38 }
 0x772   :  { %v2107_v62 = vmul.f32 %v2101_v7, %v3487_v19  ;;  %v2104_v14 = vadd.f32 %v2544_v12, %v2522_v58  ;;  %v2221_v19 = vmul.f32 %v2220_v2, %v2220_v2 }
 0x774   :  { %v2108_v41 = vmul.f32 %v2104_v14, %v3489_v23 }
 0x776   :  { %v2125_v1 = vpack.c.bf16 %v2108_v41, %v2107_v62 }
 0x778   :  { %2631 = vmatmul.mubr.bf16.vlgmr.msra.gmra.mrb[20].mxu1 %v2125_v1 }
 0x84b   :  { %v2208_v54 = vpop.f32.mrb[20].mxu1 }
 0x84c   :  { %v2228_v29 = vadd.f32 %v2208_v54, %v196_v24  ;;  %v2632_v30 = vpop.f32.mrb[21].mxu1 }
 0x84d   :  { %v2211_v18 = vpop.f32.mrb[22].mxu1 }
 0x84e   :  { %v2215_v60 = vadd.f32 %v2211_v18, %v196_v24  ;;  %v2633_v42 = vpop.f32.mrb[23].mxu1  ;;  %v2229_v43 = vsub.f32 %v2930_v39, %v2228_v29 }
 0x850   :  { %v2230_v31 = vmul.f32 %v2229_v43, %v2229_v43  ;;  %v2216_v45 = vsub.f32 %v2930_v39, %v2215_v60 }
 0x852   :  { %2231 = vadd.xlane.f32.xlu0 %v2230_v31  ;;  %v2217_v46 = vmul.f32 %v2216_v45, %v2216_v45 }
 0x854   :  { %2218 = vadd.xlane.f32.xlu1 %v2217_v46 }
 0x856   :  { %2222 = vadd.xlane.f32.xlu0 %v2221_v19 }
 0x8df   :  { %v2232_v23 = vpop.xlane.xlu0 %2231 }
 0x8e0   :  { %2927 = vrsqrt.f32 %v2232_v23  ;;  %vm2235_vm11 = vcmp.eq.f32.partialorder %v2232_v23, inf  ;;  %v2238_v61 = vand.u32 2147483648, %v2232_v23  ;;  %vm2237_vm0 = vcmp.eq.f32.partialorder %v2232_v23, 0.0 }
 0x8e1   :  { %v2219_v4 = vpop.xlane.xlu1 %2218 }
 0x8e3   :  { %v2223_v15 = vpop.xlane.xlu0 %2222 }
 0x8e4   :  { %v2224_v47 = vmul.f32 0.5, %v2223_v15 }
 0x8e6   :  { %v2227_v49 = vsub.f32 %v2224_v47, %v2226_v44 }
 0x8e8   :  { %2242 = vst.msk [vmem:[#allocation20] sm:$0xff] %vm2241_vm9, %v2227_v49 }
 0x8ea   :  { %v2928_v25 = vpop.eup %2927 }
 0x8eb   :  { %v2234_v63 = vmul.f32 %v2928_v25, %v2232_v23 }
 0x8ed   :  { %v2236_v48 = vsel %vm2235_vm11, %v2232_v23, %v2234_v63 }
 0x8ee   :  { %v2239_v3 = vsel %vm2237_vm0, %v2238_v61, %v2236_v48 }
 0x8ef   :  { %2244 = vst.msk [vmem:[#allocation20] sm:$0xff] %vm2243_vm12, %v2239_v3 }
 0x8f0   :  { %2246 = vst.msk [vmem:[#allocation20] sm:$0xff] %vm2245_vm13, %v2219_v4 }
 0x8f1   :  { %3184 = shalt.err (!%p3181_p8)
}
 0x8f2   :  { %s3185_s1 = scalar_lea.hbm %s3813_s15, 128 }
 0x8f3   :  { %p3186_p9 = scmp.ne.s32.totalorder %s3813_s15, %s3185_s1  ;;  %p3189_p10 = scmp.lt.u32.totalorder %s3185_s1, %s3813_s15 }
 0x8f5   :  { %p3191_p11 = pnand %p3189_p10, %p3186_p9 }
 0x8f7   :  { %3194 = shalt.err (!%p3191_p11)
}
 0x8f8   :  { %2256 = dma.vmem_to_hbm [thread:$0]  %s2254_s26, 128, %s3813_s15, [#allocation4]  }
 0x8f9   :  { %3207 = dma.done.wait [#allocation4], 128  }
 0x8fa   :  { %3208 = vsyncadd [#allocation4], 4294967168 }
 0x8fb   :  { %2260 = vsyncpa [#allocation3], 1 }
 0x8fc   :  { %2261 = vsyncpa [#allocation6], 1 }
 0x8fd   :  { %2262 = vsyncpa [#allocation9], 1 }
 0x8fe   :  { %2263 = vsyncpa [#allocation12], 1 }
 0x8ff   :  { %2264 = vsyncpa [#allocation15], 1 }
 0x900   :  { %2265 = vsyncpa [#allocation18], 1 }
 0x901   :  { %2266 = vsyncpa [#allocation4], 1 }

</bundles_post_ra>
